<compile_context>
chip_gen: v5e
topology: v5e:2x2
jax: 0.10.0
libtpu: 0.0.40
codegen_flags: <defaults>
</compile_context>

<pallas_src>
import jax
import jax.numpy as jnp
import numpy as np
from jax.experimental import pallas as pl
from jax.experimental.pallas import tpu as pltpu

EPS = 1e-5
KS = 3                    # kernel_size=3, stride=1, padding=1 (module defaults)
PAD = KS // 2
LANES = 128
VMEM_BUDGET = 16 * 1024 * 1024      # per-phase working-set budget (conservative)
VMEM_LIMIT = 48 * 1024 * 1024       # compiler scoped-VMEM cap (safe on v7x 64 MiB)


def _round_up(x, m):
    return (x + m - 1) // m * m


def _largest_divisor_tile(H, per_row_bytes, fixed_bytes=0, budget=VMEM_BUDGET):
    """Largest divisor of H whose working set fits the VMEM budget."""
    best = 1
    for t in range(1, H + 1):
        if H % t == 0 and fixed_bytes + t * per_row_bytes <= budget:
            best = t
    return best


# ---------------------------------------------------------------------------
# Phase 1: tiled conv + per-batch partial BN statistics
# ---------------------------------------------------------------------------
def conv_stats_kernel(x_ref, w_ref, conv_ref, stats_ref, acc_ref):
    # x_ref    : (KS, 1, TH, W+2, Cin_p)  dy-shifted, width-padded NHWC rows
    # w_ref    : (KS, KS, Cin_p, Cout_p)  HWIO weights (resident across grid)
    # conv_ref : (1, TH, W, Cout_p)       pre-BN conv tile (f32) -> HBM
    # stats_ref: (1, 2, Cout_p)           per-batch running [sum, sum_sq]
    # acc_ref  : (TH*W, Cout_p) f32       VMEM scratch accumulator
    r = pl.program_id(1)

    @pl.when(r == 0)
    def _init_stats():
        stats_ref[...] = jnp.zeros_like(stats_ref)

    _, th, w_out, cout_p = conv_ref.shape
    cin_p = x_ref.shape[-1]

    # 3x3 conv as 9 (TH*W, Cin_p) x (Cin_p, Cout_p) MXU matmuls accumulated
    # into the VMEM scratch.  Inputs go to the MXU in their native dtype.
    first = True
    for dy in range(KS):
        for dx in range(KS):
            patch = x_ref[dy, 0, :, dx:dx + w_out, :].reshape(th * w_out, cin_p)
            contrib = jnp.dot(patch, w_ref[dy, dx],
                              preferred_element_type=jnp.float32)
            if first:
                acc_ref[...] = contrib
                first = False
            else:
                acc_ref[...] += contrib

    acc = acc_ref[...]
    conv_ref[0] = acc.reshape(th, w_out, cout_p)

    # Partial BN stats for this tile (stats output block is resident across
    # the "arbitrary" row-tile axis, so += accumulates across tiles).
    stats_ref[0, 0:1, :] += jnp.sum(acc, axis=0, keepdims=True)
    stats_ref[0, 1:2, :] += jnp.sum(acc * acc, axis=0, keepdims=True)


# ---------------------------------------------------------------------------
# Phase 2: folded BatchNorm (scale/shift) + ReLU, purely mem-bound
# ---------------------------------------------------------------------------
def bn_relu_kernel(conv_ref, params_ref, o_ref):
    # params_ref: (2, Cout_p)  row 0 = scale, row 1 = shift
    scale = params_ref[0]
    shift = params_ref[1]
    y = conv_ref[...] * scale + shift
    o_ref[...] = jnp.maximum(y, 0.0).astype(o_ref.dtype)


def conv_bn_relu(x_nchw, w_oihw, gamma, beta, *, block_h=None):
    """PyTorch-facing wrapper: NCHW in, NCHW out."""
    N, Cin, H, W = x_nchw.shape
    Cout = w_oihw.shape[0]

    Cin_p = _round_up(Cin, LANES)
    Cout_p = _round_up(Cout, LANES)
    Wp2 = W + 2 * PAD
    x_itemsize = x_nchw.dtype.itemsize

    # TODO(synk): the NCHW<->NHWC transposes and the dy-shifted halo copy are
    # extra HBM passes done by XLA outside the kernels; they could be removed
    # with an in-kernel transpose / manual halo DMA if the surrounding model
    # truly requires NCHW end to end.
    x_nhwc = jnp.transpose(x_nchw, (0, 2, 3, 1))
    x_p = jnp.pad(x_nhwc, ((0, 0), (PAD, PAD), (PAD, PAD), (0, Cin_p - Cin)))
    # Three dy-shifted row views so the 3x3 row halo never crosses a row-tile
    # boundary: blocks stay non-overlapping and fully BlockSpec-pipelined.
    x_sh = jnp.stack([x_p[:, dy:dy + H] for dy in range(KS)], axis=0)
    # x_sh: (KS, N, H, W+2, Cin_p)

    w_hwio = jnp.transpose(w_oihw, (2, 3, 1, 0))          # (KS, KS, Cin, Cout)
    w_p = jnp.pad(w_hwio,
                  ((0, 0), (0, 0), (0, Cin_p - Cin), (0, Cout_p - Cout)))

    # ---- phase-1 tile height -------------------------------------------------
    w_bytes = KS * KS * Cin_p * Cout_p * 4 * 2             # resident weights (2 bufs)
    p1_row = (KS * Wp2 * Cin_p * x_itemsize * 2            # shifted input rows, 2 bufs
              + W * Cout_p * 4 * 2                         # conv tile out, 2 bufs
              + W * Cout_p * 4)                            # f32 accumulator scratch
    if block_h is None:
        th = _largest_divisor_tile(H, p1_row, w_bytes)
    else:
        th = max(1, min(block_h, H))
        while H % th:
            th -= 1
    n_rt = H // th

    # ---- phase 1: conv tiles + per-batch partial stats -----------------------
    conv_out, stats = pl.pallas_call(
        conv_stats_kernel,
        out_shape=(
            jax.ShapeDtypeStruct((N, H, W, Cout_p), jnp.float32),
            jax.ShapeDtypeStruct((N, 2, Cout_p), jnp.float32),
        ),
        grid_spec=pltpu.PrefetchScalarGridSpec(
            num_scalar_prefetch=0,
            grid=(N, n_rt),
            in_specs=[
                pl.BlockSpec((KS, 1, th, Wp2, Cin_p),
                             lambda n, r: (0, n, r, 0, 0)),
                pl.BlockSpec((KS, KS, Cin_p, Cout_p),
                             lambda n, r: (0, 0, 0, 0)),
            ],
            out_specs=[
                pl.BlockSpec((1, th, W, Cout_p), lambda n, r: (n, r, 0, 0)),
                pl.BlockSpec((1, 2, Cout_p), lambda n, r: (n, 0, 0)),
            ],
            scratch_shapes=[pltpu.VMEM((th * W, Cout_p), jnp.float32)],
        ),
        compiler_params=pltpu.CompilerParams(
            dimension_semantics=("parallel", "arbitrary"),
            vmem_limit_bytes=VMEM_LIMIT),
    )(x_sh, w_p)

    # ---- tiny glue: global batch stats -> folded per-channel scale/shift ----
    count = jnp.float32(N * H * W)
    ch_sum = jnp.sum(stats[:, 0, :], axis=0)
    ch_sq = jnp.sum(stats[:, 1, :], axis=0)
    mean = ch_sum / count
    var = jnp.maximum(ch_sq / count - mean * mean, 0.0)     # biased variance
    gamma_p = jnp.pad(gamma.astype(jnp.float32), (0, Cout_p - Cout))
    beta_p = jnp.pad(beta.astype(jnp.float32), (0, Cout_p - Cout))
    inv = jax.lax.rsqrt(var + EPS)
    scale = gamma_p * inv
    shift = beta_p - mean * gamma_p * inv
    params = jnp.stack([scale, shift], axis=0)              # (2, Cout_p)

    # ---- phase-2 tile height (elementwise -> can be much taller) -------------
    out_itemsize = x_nchw.dtype.itemsize
    p2_row = W * Cout_p * (4 * 2 + out_itemsize * 2)
    th2 = _largest_divisor_tile(H, p2_row, 2 * Cout_p * 4 * 2)
    n_rt2 = H // th2

    # ---- phase 2: y = conv*scale + shift, ReLU --------------------------------
    out_nhwc = pl.pallas_call(
        bn_relu_kernel,
        out_shape=jax.ShapeDtypeStruct((N, H, W, Cout_p), x_nchw.dtype),
        grid_spec=pltpu.PrefetchScalarGridSpec(
            num_scalar_prefetch=0,
            grid=(N, n_rt2),
            in_specs=[
                pl.BlockSpec((1, th2, W, Cout_p), lambda n, r: (n, r, 0, 0)),
                pl.BlockSpec((2, Cout_p), lambda n, r: (0, 0)),
            ],
            out_specs=pl.BlockSpec((1, th2, W, Cout_p),
                                   lambda n, r: (n, r, 0, 0)),
        ),
        compiler_params=pltpu.CompilerParams(
            dimension_semantics=("parallel", "parallel"),
            vmem_limit_bytes=VMEM_LIMIT),
    )(conv_out, params)

    return jnp.transpose(out_nhwc[..., :Cout], (0, 3, 1, 2))


def _reference(x_nchw, w_oihw, gamma, beta):
    """Plain-JAX reference (lax conv + batch-stat BN + ReLU)."""
    y = jax.lax.conv_general_dilated(
        x_nchw, w_oihw, window_strides=(1, 1),
        padding=((PAD, PAD), (PAD, PAD)),
        dimension_numbers=("NCHW", "OIHW", "NCHW"),
    )
    mean = jnp.mean(y, axis=(0, 2, 3), keepdims=True)
    var = jnp.mean((y - mean) ** 2, axis=(0, 2, 3), keepdims=True)
    y = (y - mean) * jax.lax.rsqrt(var + EPS)
    y = y * gamma.reshape(1, -1, 1, 1) + beta.reshape(1, -1, 1, 1)
    return jnp.maximum(y, 0.0)


if __name__ == "__main__":
    N, Cin, Cout, H, W = 2, 4, 8, 16, 16

    key = jax.random.PRNGKey(0)
    kx, kw = jax.random.split(key)

    x = jax.random.normal(kx, (N, Cin, H, W), dtype=jnp.float32)

    # kaiming_normal_(a=1): gain = sqrt(2/(1+a^2)) = 1, fan_in = Cin*KS*KS
    std = 1.0 / np.sqrt(Cin * KS * KS)
    w = jax.random.normal(kw, (Cout, Cin, KS, KS), dtype=jnp.float32) * std

    # BatchNorm2d default affine init
    gamma = jnp.ones((Cout,), dtype=jnp.float32)
    beta = jnp.zeros((Cout,), dtype=jnp.float32)

    # block_h=8 forces 2 row tiles per image so the cross-tile BN reduction
    # path is exercised even at this tiny demo size.
    out = conv_bn_relu(x, w, gamma, beta, block_h=8)
    out = jax.block_until_ready(out)

    ref = jax.block_until_ready(_reference(x, w, gamma, beta))
    np.testing.assert_allclose(np.asarray(out), np.asarray(ref),
                               rtol=1e-4, atol=1e-4)

    print("KERNEL_OK")
</pallas_src>

<mosaic_0001>
module attributes {stable_mosaic.version = 11 : i64} {
  func.func @conv_stats_kernel(%arg0: i32, %arg1: i32, %arg2: memref<3x1x8x18x128xf32, #tpu.memory_space<vmem>>, %arg3: memref<3x3x128x128xf32, #tpu.memory_space<vmem>>, %arg4: memref<1x8x16x128xf32, #tpu.memory_space<vmem>>, %arg5: memref<1x2x128xf32, #tpu.memory_space<vmem>>, %arg6: memref<128x128xf32, #tpu.memory_space<vmem>>) attributes {dimension_semantics = [#tpu.dimension_semantics<parallel>, #tpu.dimension_semantics<arbitrary>], iteration_bounds = array<i64: 2, 2>, scalar_prefetch = 0 : i64, scratch_operands = 1 : i64, tpu.core_type = #tpu.core_type<tc>, window_params = [{transform_indices = @transform_0, window_bounds = array<i64: 3, 1, 8, 18, 128>}, {pipeline_mode = #tpu.pipeline_mode<synchronous>, transform_indices = @transform_1, window_bounds = array<i64: 3, 3, 128, 128>}, {transform_indices = @transform_2, window_bounds = array<i64: 1, 8, 16, 128>}, {transform_indices = @transform_3, window_bounds = array<i64: 1, 2, 128>}]} {
    %c0_i32 = arith.constant 0 : i32
    %0 = arith.cmpi eq, %arg1, %c0_i32 : i32
    %1 = arith.extui %0 : i1 to i32
    %c0_i32_0 = arith.constant 0 : i32
    %2 = arith.cmpi ne, %1, %c0_i32_0 : i32
    scf.if %2 {
      %cst_141 = arith.constant 0.000000e+00 : f32
      %104 = vector.broadcast %cst_141 : f32 to vector<1x2x128xf32>
      %c0_142 = arith.constant 0 : index
      %c0_143 = arith.constant 0 : index
      %c0_144 = arith.constant 0 : index
      %105 = vector.load %arg5[%c0_142, %c0_143, %c0_144] : memref<1x2x128xf32, #tpu.memory_space<vmem>>, vector<1x2x128xf32>
      tpu.vector_store %arg5[%c0_142, %c0_143, %c0_144], %104 {strides = array<i32>} : memref<1x2x128xf32, #tpu.memory_space<vmem>>, vector<1x2x128xf32>,
    } else {
    }
    %c0 = arith.constant 0 : index
    %c0_1 = arith.constant 0 : index
    %c0_2 = arith.constant 0 : index
    %c0_3 = arith.constant 0 : index
    %c0_4 = arith.constant 0 : index
    %3 = vector.load %arg2[%c0, %c0_1, %c0_2, %c0_3, %c0_4] : memref<3x1x8x18x128xf32, #tpu.memory_space<vmem>>, vector<1x1x8x16x128xf32>
    %4 = vector.shape_cast %3 : vector<1x1x8x16x128xf32> to vector<8x16x128xf32>
    %5 = vector.shape_cast %4 : vector<8x16x128xf32> to vector<128x128xf32>
    %c0_5 = arith.constant 0 : index
    %c0_6 = arith.constant 0 : index
    %c0_7 = arith.constant 0 : index
    %c0_8 = arith.constant 0 : index
    %6 = vector.load %arg3[%c0_5, %c0_6, %c0_7, %c0_8] : memref<3x3x128x128xf32, #tpu.memory_space<vmem>>, vector<1x1x128x128xf32>
    %7 = vector.shape_cast %6 : vector<1x1x128x128xf32> to vector<128x128xf32>
    %cst = arith.constant dense<0.000000e+00> : vector<128x128xf32>
    %8 = tpu.matmul %5, %7, %cst {dimension_numbers = #tpu.dot_dimension_numbers<[1], [0], [0], [1], [0, 0, 1, 1], [], []>} : vector<128x128xf32>, vector<128x128xf32>, vector<128x128xf32> -> vector<128x128xf32>
    %c0_9 = arith.constant 0 : index
    %c0_10 = arith.constant 0 : index
    %9 = vector.load %arg6[%c0_9, %c0_10] : memref<128x128xf32, #tpu.memory_space<vmem>>, vector<128x128xf32>
    tpu.vector_store %arg6[%c0_9, %c0_10], %8 {strides = array<i32>} : memref<128x128xf32, #tpu.memory_space<vmem>>, vector<128x128xf32>,
    %c0_11 = arith.constant 0 : index
    %c0_12 = arith.constant 0 : index
    %c0_13 = arith.constant 0 : index
    %c1 = arith.constant 1 : index
    %c0_14 = arith.constant 0 : index
    %10 = vector.load %arg2[%c0_11, %c0_12, %c0_13, %c1, %c0_14] : memref<3x1x8x18x128xf32, #tpu.memory_space<vmem>>, vector<1x1x8x16x128xf32>
    %11 = vector.shape_cast %10 : vector<1x1x8x16x128xf32> to vector<8x16x128xf32>
    %12 = vector.shape_cast %11 : vector<8x16x128xf32> to vector<128x128xf32>
    %c0_15 = arith.constant 0 : index
    %c1_16 = arith.constant 1 : index
    %c0_17 = arith.constant 0 : index
    %c0_18 = arith.constant 0 : index
    %13 = vector.load %arg3[%c0_15, %c1_16, %c0_17, %c0_18] : memref<3x3x128x128xf32, #tpu.memory_space<vmem>>, vector<1x1x128x128xf32>
    %14 = vector.shape_cast %13 : vector<1x1x128x128xf32> to vector<128x128xf32>
    %cst_19 = arith.constant dense<0.000000e+00> : vector<128x128xf32>
    %15 = tpu.matmul %12, %14, %cst_19 {dimension_numbers = #tpu.dot_dimension_numbers<[1], [0], [0], [1], [0, 0, 1, 1], [], []>} : vector<128x128xf32>, vector<128x128xf32>, vector<128x128xf32> -> vector<128x128xf32>
    %c0_20 = arith.constant 0 : index
    %c0_21 = arith.constant 0 : index
    %16 = vector.load %arg6[%c0_20, %c0_21] : memref<128x128xf32, #tpu.memory_space<vmem>>, vector<128x128xf32>
    %17 = arith.addf %16, %15 : vector<128x128xf32>
    %c0_22 = arith.constant 0 : index
    %c0_23 = arith.constant 0 : index
    %18 = vector.load %arg6[%c0_22, %c0_23] : memref<128x128xf32, #tpu.memory_space<vmem>>, vector<128x128xf32>
    tpu.vector_store %arg6[%c0_22, %c0_23], %17 {strides = array<i32>} : memref<128x128xf32, #tpu.memory_space<vmem>>, vector<128x128xf32>,
    %c0_24 = arith.constant 0 : index
    %c0_25 = arith.constant 0 : index
    %c0_26 = arith.constant 0 : index
    %c2 = arith.constant 2 : index
    %c0_27 = arith.constant 0 : index
    %19 = vector.load %arg2[%c0_24, %c0_25, %c0_26, %c2, %c0_27] : memref<3x1x8x18x128xf32, #tpu.memory_space<vmem>>, vector<1x1x8x16x128xf32>
    %20 = vector.shape_cast %19 : vector<1x1x8x16x128xf32> to vector<8x16x128xf32>
    %21 = vector.shape_cast %20 : vector<8x16x128xf32> to vector<128x128xf32>
    %c0_28 = arith.constant 0 : index
    %c2_29 = arith.constant 2 : index
    %c0_30 = arith.constant 0 : index
    %c0_31 = arith.constant 0 : index
    %22 = vector.load %arg3[%c0_28, %c2_29, %c0_30, %c0_31] : memref<3x3x128x128xf32, #tpu.memory_space<vmem>>, vector<1x1x128x128xf32>
    %23 = vector.shape_cast %22 : vector<1x1x128x128xf32> to vector<128x128xf32>
    %cst_32 = arith.constant dense<0.000000e+00> : vector<128x128xf32>
    %24 = tpu.matmul %21, %23, %cst_32 {dimension_numbers = #tpu.dot_dimension_numbers<[1], [0], [0], [1], [0, 0, 1, 1], [], []>} : vector<128x128xf32>, vector<128x128xf32>, vector<128x128xf32> -> vector<128x128xf32>
    %c0_33 = arith.constant 0 : index
    %c0_34 = arith.constant 0 : index
    %25 = vector.load %arg6[%c0_33, %c0_34] : memref<128x128xf32, #tpu.memory_space<vmem>>, vector<128x128xf32>
    %26 = arith.addf %25, %24 : vector<128x128xf32>
    %c0_35 = arith.constant 0 : index
    %c0_36 = arith.constant 0 : index
    %27 = vector.load %arg6[%c0_35, %c0_36] : memref<128x128xf32, #tpu.memory_space<vmem>>, vector<128x128xf32>
    tpu.vector_store %arg6[%c0_35, %c0_36], %26 {strides = array<i32>} : memref<128x128xf32, #tpu.memory_space<vmem>>, vector<128x128xf32>,
    %c1_37 = arith.constant 1 : index
    %c0_38 = arith.constant 0 : index
    %c0_39 = arith.constant 0 : index
    %c0_40 = arith.constant 0 : index
    %c0_41 = arith.constant 0 : index
    %28 = vector.load %arg2[%c1_37, %c0_38, %c0_39, %c0_40, %c0_41] : memref<3x1x8x18x128xf32, #tpu.memory_space<vmem>>, vector<1x1x8x16x128xf32>
    %29 = vector.shape_cast %28 : vector<1x1x8x16x128xf32> to vector<8x16x128xf32>
    %30 = vector.shape_cast %29 : vector<8x16x128xf32> to vector<128x128xf32>
    %c1_42 = arith.constant 1 : index
    %c0_43 = arith.constant 0 : index
    %c0_44 = arith.constant 0 : index
    %c0_45 = arith.constant 0 : index
    %31 = vector.load %arg3[%c1_42, %c0_43, %c0_44, %c0_45] : memref<3x3x128x128xf32, #tpu.memory_space<vmem>>, vector<1x1x128x128xf32>
    %32 = vector.shape_cast %31 : vector<1x1x128x128xf32> to vector<128x128xf32>
    %cst_46 = arith.constant dense<0.000000e+00> : vector<128x128xf32>
    %33 = tpu.matmul %30, %32, %cst_46 {dimension_numbers = #tpu.dot_dimension_numbers<[1], [0], [0], [1], [0, 0, 1, 1], [], []>} : vector<128x128xf32>, vector<128x128xf32>, vector<128x128xf32> -> vector<128x128xf32>
    %c0_47 = arith.constant 0 : index
    %c0_48 = arith.constant 0 : index
    %34 = vector.load %arg6[%c0_47, %c0_48] : memref<128x128xf32, #tpu.memory_space<vmem>>, vector<128x128xf32>
    %35 = arith.addf %34, %33 : vector<128x128xf32>
    %c0_49 = arith.constant 0 : index
    %c0_50 = arith.constant 0 : index
    %36 = vector.load %arg6[%c0_49, %c0_50] : memref<128x128xf32, #tpu.memory_space<vmem>>, vector<128x128xf32>
    tpu.vector_store %arg6[%c0_49, %c0_50], %35 {strides = array<i32>} : memref<128x128xf32, #tpu.memory_space<vmem>>, vector<128x128xf32>,
    %c1_51 = arith.constant 1 : index
    %c0_52 = arith.constant 0 : index
    %c0_53 = arith.constant 0 : index
    %c1_54 = arith.constant 1 : index
    %c0_55 = arith.constant 0 : index
    %37 = vector.load %arg2[%c1_51, %c0_52, %c0_53, %c1_54, %c0_55] : memref<3x1x8x18x128xf32, #tpu.memory_space<vmem>>, vector<1x1x8x16x128xf32>
    %38 = vector.shape_cast %37 : vector<1x1x8x16x128xf32> to vector<8x16x128xf32>
    %39 = vector.shape_cast %38 : vector<8x16x128xf32> to vector<128x128xf32>
    %c1_56 = arith.constant 1 : index
    %c1_57 = arith.constant 1 : index
    %c0_58 = arith.constant 0 : index
    %c0_59 = arith.constant 0 : index
    %40 = vector.load %arg3[%c1_56, %c1_57, %c0_58, %c0_59] : memref<3x3x128x128xf32, #tpu.memory_space<vmem>>, vector<1x1x128x128xf32>
    %41 = vector.shape_cast %40 : vector<1x1x128x128xf32> to vector<128x128xf32>
    %cst_60 = arith.constant dense<0.000000e+00> : vector<128x128xf32>
    %42 = tpu.matmul %39, %41, %cst_60 {dimension_numbers = #tpu.dot_dimension_numbers<[1], [0], [0], [1], [0, 0, 1, 1], [], []>} : vector<128x128xf32>, vector<128x128xf32>, vector<128x128xf32> -> vector<128x128xf32>
    %c0_61 = arith.constant 0 : index
    %c0_62 = arith.constant 0 : index
    %43 = vector.load %arg6[%c0_61, %c0_62] : memref<128x128xf32, #tpu.memory_space<vmem>>, vector<128x128xf32>
    %44 = arith.addf %43, %42 : vector<128x128xf32>
    %c0_63 = arith.constant 0 : index
    %c0_64 = arith.constant 0 : index
    %45 = vector.load %arg6[%c0_63, %c0_64] : memref<128x128xf32, #tpu.memory_space<vmem>>, vector<128x128xf32>
    tpu.vector_store %arg6[%c0_63, %c0_64], %44 {strides = array<i32>} : memref<128x128xf32, #tpu.memory_space<vmem>>, vector<128x128xf32>,
    %c1_65 = arith.constant 1 : index
    %c0_66 = arith.constant 0 : index
    %c0_67 = arith.constant 0 : index
    %c2_68 = arith.constant 2 : index
    %c0_69 = arith.constant 0 : index
    %46 = vector.load %arg2[%c1_65, %c0_66, %c0_67, %c2_68, %c0_69] : memref<3x1x8x18x128xf32, #tpu.memory_space<vmem>>, vector<1x1x8x16x128xf32>
    %47 = vector.shape_cast %46 : vector<1x1x8x16x128xf32> to vector<8x16x128xf32>
    %48 = vector.shape_cast %47 : vector<8x16x128xf32> to vector<128x128xf32>
    %c1_70 = arith.constant 1 : index
    %c2_71 = arith.constant 2 : index
    %c0_72 = arith.constant 0 : index
    %c0_73 = arith.constant 0 : index
    %49 = vector.load %arg3[%c1_70, %c2_71, %c0_72, %c0_73] : memref<3x3x128x128xf32, #tpu.memory_space<vmem>>, vector<1x1x128x128xf32>
    %50 = vector.shape_cast %49 : vector<1x1x128x128xf32> to vector<128x128xf32>
    %cst_74 = arith.constant dense<0.000000e+00> : vector<128x128xf32>
    %51 = tpu.matmul %48, %50, %cst_74 {dimension_numbers = #tpu.dot_dimension_numbers<[1], [0], [0], [1], [0, 0, 1, 1], [], []>} : vector<128x128xf32>, vector<128x128xf32>, vector<128x128xf32> -> vector<128x128xf32>
    %c0_75 = arith.constant 0 : index
    %c0_76 = arith.constant 0 : index
    %52 = vector.load %arg6[%c0_75, %c0_76] : memref<128x128xf32, #tpu.memory_space<vmem>>, vector<128x128xf32>
    %53 = arith.addf %52, %51 : vector<128x128xf32>
    %c0_77 = arith.constant 0 : index
    %c0_78 = arith.constant 0 : index
    %54 = vector.load %arg6[%c0_77, %c0_78] : memref<128x128xf32, #tpu.memory_space<vmem>>, vector<128x128xf32>
    tpu.vector_store %arg6[%c0_77, %c0_78], %53 {strides = array<i32>} : memref<128x128xf32, #tpu.memory_space<vmem>>, vector<128x128xf32>,
    %c2_79 = arith.constant 2 : index
    %c0_80 = arith.constant 0 : index
    %c0_81 = arith.constant 0 : index
    %c0_82 = arith.constant 0 : index
    %c0_83 = arith.constant 0 : index
    %55 = vector.load %arg2[%c2_79, %c0_80, %c0_81, %c0_82, %c0_83] : memref<3x1x8x18x128xf32, #tpu.memory_space<vmem>>, vector<1x1x8x16x128xf32>
    %56 = vector.shape_cast %55 : vector<1x1x8x16x128xf32> to vector<8x16x128xf32>
    %57 = vector.shape_cast %56 : vector<8x16x128xf32> to vector<128x128xf32>
    %c2_84 = arith.constant 2 : index
    %c0_85 = arith.constant 0 : index
    %c0_86 = arith.constant 0 : index
    %c0_87 = arith.constant 0 : index
    %58 = vector.load %arg3[%c2_84, %c0_85, %c0_86, %c0_87] : memref<3x3x128x128xf32, #tpu.memory_space<vmem>>, vector<1x1x128x128xf32>
    %59 = vector.shape_cast %58 : vector<1x1x128x128xf32> to vector<128x128xf32>
    %cst_88 = arith.constant dense<0.000000e+00> : vector<128x128xf32>
    %60 = tpu.matmul %57, %59, %cst_88 {dimension_numbers = #tpu.dot_dimension_numbers<[1], [0], [0], [1], [0, 0, 1, 1], [], []>} : vector<128x128xf32>, vector<128x128xf32>, vector<128x128xf32> -> vector<128x128xf32>
    %c0_89 = arith.constant 0 : index
    %c0_90 = arith.constant 0 : index
    %61 = vector.load %arg6[%c0_89, %c0_90] : memref<128x128xf32, #tpu.memory_space<vmem>>, vector<128x128xf32>
    %62 = arith.addf %61, %60 : vector<128x128xf32>
    %c0_91 = arith.constant 0 : index
    %c0_92 = arith.constant 0 : index
    %63 = vector.load %arg6[%c0_91, %c0_92] : memref<128x128xf32, #tpu.memory_space<vmem>>, vector<128x128xf32>
    tpu.vector_store %arg6[%c0_91, %c0_92], %62 {strides = array<i32>} : memref<128x128xf32, #tpu.memory_space<vmem>>, vector<128x128xf32>,
    %c2_93 = arith.constant 2 : index
    %c0_94 = arith.constant 0 : index
    %c0_95 = arith.constant 0 : index
    %c1_96 = arith.constant 1 : index
    %c0_97 = arith.constant 0 : index
    %64 = vector.load %arg2[%c2_93, %c0_94, %c0_95, %c1_96, %c0_97] : memref<3x1x8x18x128xf32, #tpu.memory_space<vmem>>, vector<1x1x8x16x128xf32>
    %65 = vector.shape_cast %64 : vector<1x1x8x16x128xf32> to vector<8x16x128xf32>
    %66 = vector.shape_cast %65 : vector<8x16x128xf32> to vector<128x128xf32>
    %c2_98 = arith.constant 2 : index
    %c1_99 = arith.constant 1 : index
    %c0_100 = arith.constant 0 : index
    %c0_101 = arith.constant 0 : index
    %67 = vector.load %arg3[%c2_98, %c1_99, %c0_100, %c0_101] : memref<3x3x128x128xf32, #tpu.memory_space<vmem>>, vector<1x1x128x128xf32>
    %68 = vector.shape_cast %67 : vector<1x1x128x128xf32> to vector<128x128xf32>
    %cst_102 = arith.constant dense<0.000000e+00> : vector<128x128xf32>
    %69 = tpu.matmul %66, %68, %cst_102 {dimension_numbers = #tpu.dot_dimension_numbers<[1], [0], [0], [1], [0, 0, 1, 1], [], []>} : vector<128x128xf32>, vector<128x128xf32>, vector<128x128xf32> -> vector<128x128xf32>
    %c0_103 = arith.constant 0 : index
    %c0_104 = arith.constant 0 : index
    %70 = vector.load %arg6[%c0_103, %c0_104] : memref<128x128xf32, #tpu.memory_space<vmem>>, vector<128x128xf32>
    %71 = arith.addf %70, %69 : vector<128x128xf32>
    %c0_105 = arith.constant 0 : index
    %c0_106 = arith.constant 0 : index
    %72 = vector.load %arg6[%c0_105, %c0_106] : memref<128x128xf32, #tpu.memory_space<vmem>>, vector<128x128xf32>
    tpu.vector_store %arg6[%c0_105, %c0_106], %71 {strides = array<i32>} : memref<128x128xf32, #tpu.memory_space<vmem>>, vector<128x128xf32>,
    %c2_107 = arith.constant 2 : index
    %c0_108 = arith.constant 0 : index
    %c0_109 = arith.constant 0 : index
    %c2_110 = arith.constant 2 : index
    %c0_111 = arith.constant 0 : index
    %73 = vector.load %arg2[%c2_107, %c0_108, %c0_109, %c2_110, %c0_111] : memref<3x1x8x18x128xf32, #tpu.memory_space<vmem>>, vector<1x1x8x16x128xf32>
    %74 = vector.shape_cast %73 : vector<1x1x8x16x128xf32> to vector<8x16x128xf32>
    %75 = vector.shape_cast %74 : vector<8x16x128xf32> to vector<128x128xf32>
    %c2_112 = arith.constant 2 : index
    %c2_113 = arith.constant 2 : index
    %c0_114 = arith.constant 0 : index
    %c0_115 = arith.constant 0 : index
    %76 = vector.load %arg3[%c2_112, %c2_113, %c0_114, %c0_115] : memref<3x3x128x128xf32, #tpu.memory_space<vmem>>, vector<1x1x128x128xf32>
    %77 = vector.shape_cast %76 : vector<1x1x128x128xf32> to vector<128x128xf32>
    %cst_116 = arith.constant dense<0.000000e+00> : vector<128x128xf32>
    %78 = tpu.matmul %75, %77, %cst_116 {dimension_numbers = #tpu.dot_dimension_numbers<[1], [0], [0], [1], [0, 0, 1, 1], [], []>} : vector<128x128xf32>, vector<128x128xf32>, vector<128x128xf32> -> vector<128x128xf32>
    %c0_117 = arith.constant 0 : index
    %c0_118 = arith.constant 0 : index
    %79 = vector.load %arg6[%c0_117, %c0_118] : memref<128x128xf32, #tpu.memory_space<vmem>>, vector<128x128xf32>
    %80 = arith.addf %79, %78 : vector<128x128xf32>
    %c0_119 = arith.constant 0 : index
    %c0_120 = arith.constant 0 : index
    %81 = vector.load %arg6[%c0_119, %c0_120] : memref<128x128xf32, #tpu.memory_space<vmem>>, vector<128x128xf32>
    tpu.vector_store %arg6[%c0_119, %c0_120], %80 {strides = array<i32>} : memref<128x128xf32, #tpu.memory_space<vmem>>, vector<128x128xf32>,
    %c0_121 = arith.constant 0 : index
    %c0_122 = arith.constant 0 : index
    %82 = vector.load %arg6[%c0_121, %c0_122] : memref<128x128xf32, #tpu.memory_space<vmem>>, vector<128x128xf32>
    %83 = vector.shape_cast %82 : vector<128x128xf32> to vector<8x16x128xf32>
    %c0_123 = arith.constant 0 : index
    %c0_124 = arith.constant 0 : index
    %c0_125 = arith.constant 0 : index
    %c0_126 = arith.constant 0 : index
    %84 = vector.load %arg4[%c0_123, %c0_124, %c0_125, %c0_126] : memref<1x8x16x128xf32, #tpu.memory_space<vmem>>, vector<1x8x16x128xf32>
    %85 = vector.shape_cast %84 : vector<1x8x16x128xf32> to vector<8x16x128xf32>
    %86 = vector.shape_cast %83 : vector<8x16x128xf32> to vector<1x8x16x128xf32>
    tpu.vector_store %arg4[%c0_123, %c0_124, %c0_125, %c0_126], %86 {strides = array<i32>} : memref<1x8x16x128xf32, #tpu.memory_space<vmem>>, vector<1x8x16x128xf32>,
    %c0_127 = arith.constant 0 : index
    %c0_128 = arith.constant 0 : index
    %c0_129 = arith.constant 0 : index
    %87 = vector.load %arg5[%c0_127, %c0_128, %c0_129] : memref<1x2x128xf32, #tpu.memory_space<vmem>>, vector<1x1x128xf32>
    %88 = vector.shape_cast %87 : vector<1x1x128xf32> to vector<1x128xf32>
    %cst_130 = arith.constant dense<0.000000e+00> : vector<128xf32>
    %89 = vector.multi_reduction <add>, %82, %cst_130 [0] : vector<128x128xf32> to vector<128xf32>
    %90 = vector.shape_cast %89 : vector<128xf32> to vector<1x128xf32>
    %91 = arith.addf %88, %90 : vector<1x128xf32>
    %c0_131 = arith.constant 0 : index
    %c0_132 = arith.constant 0 : index
    %c0_133 = arith.constant 0 : index
    %92 = vector.load %arg5[%c0_131, %c0_132, %c0_133] : memref<1x2x128xf32, #tpu.memory_space<vmem>>, vector<1x1x128xf32>
    %93 = vector.shape_cast %92 : vector<1x1x128xf32> to vector<1x128xf32>
    %94 = vector.shape_cast %91 : vector<1x128xf32> to vector<1x1x128xf32>
    tpu.vector_store %arg5[%c0_131, %c0_132, %c0_133], %94 {strides = array<i32>} : memref<1x2x128xf32, #tpu.memory_space<vmem>>, vector<1x1x128xf32>,
    %c0_134 = arith.constant 0 : index
    %c1_135 = arith.constant 1 : index
    %c0_136 = arith.constant 0 : index
    %95 = vector.load %arg5[%c0_134, %c1_135, %c0_136] : memref<1x2x128xf32, #tpu.memory_space<vmem>>, vector<1x1x128xf32>
    %96 = vector.shape_cast %95 : vector<1x1x128xf32> to vector<1x128xf32>
    %97 = arith.mulf %82, %82 : vector<128x128xf32>
    %cst_137 = arith.constant dense<0.000000e+00> : vector<128xf32>
    %98 = vector.multi_reduction <add>, %97, %cst_137 [0] : vector<128x128xf32> to vector<128xf32>
    %99 = vector.shape_cast %98 : vector<128xf32> to vector<1x128xf32>
    %100 = arith.addf %96, %99 : vector<1x128xf32>
    %c0_138 = arith.constant 0 : index
    %c1_139 = arith.constant 1 : index
    %c0_140 = arith.constant 0 : index
    %101 = vector.load %arg5[%c0_138, %c1_139, %c0_140] : memref<1x2x128xf32, #tpu.memory_space<vmem>>, vector<1x1x128xf32>
    %102 = vector.shape_cast %101 : vector<1x1x128xf32> to vector<1x128xf32>
    %103 = vector.shape_cast %100 : vector<1x128xf32> to vector<1x1x128xf32>
    tpu.vector_store %arg5[%c0_138, %c1_139, %c0_140], %103 {strides = array<i32>} : memref<1x2x128xf32, #tpu.memory_space<vmem>>, vector<1x1x128xf32>,
    return
  }
  func.func @transform_0(%arg0: i32, %arg1: i32) -> (i32, i32, i32, i32, i32) {
    %c0_i32 = arith.constant 0 : i32
    %c0_i32_0 = arith.constant 0 : i32
    %c0_i32_1 = arith.constant 0 : i32
    %c0_i32_2 = arith.constant 0 : i32
    return %c0_i32, %arg0, %arg1, %c0_i32_0, %c0_i32_1 : i32, i32, i32, i32, i32
  }
  func.func @transform_1(%arg0: i32, %arg1: i32) -> (i32, i32, i32, i32) {
    %c0_i32 = arith.constant 0 : i32
    %c0_i32_0 = arith.constant 0 : i32
    %c0_i32_1 = arith.constant 0 : i32
    %c0_i32_2 = arith.constant 0 : i32
    %c0_i32_3 = arith.constant 0 : i32
    return %c0_i32, %c0_i32_0, %c0_i32_1, %c0_i32_2 : i32, i32, i32, i32
  }
  func.func @transform_2(%arg0: i32, %arg1: i32) -> (i32, i32, i32, i32) {
    %c0_i32 = arith.constant 0 : i32
    %c0_i32_0 = arith.constant 0 : i32
    %c0_i32_1 = arith.constant 0 : i32
    return %arg0, %arg1, %c0_i32, %c0_i32_0 : i32, i32, i32, i32
  }
  func.func @transform_3(%arg0: i32, %arg1: i32) -> (i32, i32, i32) {
    %c0_i32 = arith.constant 0 : i32
    %c0_i32_0 = arith.constant 0 : i32
    %c0_i32_1 = arith.constant 0 : i32
    return %arg0, %c0_i32, %c0_i32_0 : i32, i32, i32
  }
}

</mosaic_0001>

<bundles_post_ra>
// kernel: tpu_custom_call.1
= control target key start
LH: loop header
LB: loop body
LE: loop exit
PB: predicated region body
PF: predicated region fallthrough
CT: control target
= control target key end

     0   :  { %s3710_s0 = inlined_call_operand.vmem [shape: f32[3,2,16,18,128], index: 0, kind: input, shape index: {}]   ;;  %s3711_s1 = inlined_call_operand.vmem [shape: f32[3,3,128,128], index: 1, kind: input, shape index: {}]   ;;  %s3712_s2 = inlined_call_operand.hbm [shape: f32[2,16,16,128], index: 2, kind: output, shape index: {0}]   ;;  %s3713_s3 = inlined_call_operand.hbm [shape: f32[2,2,128], index: 3, kind: output, shape index: {1}]  }
   0x1   :  { %3719 = sst [smem:[#allocation15_spill]] %s3710_s0 }
   0x2   :  { %9 = vsyncpa [#allocation5], 0 }
   0x3   :  { %11 = vsyncpa [#allocation5 + $0x1], 0 }
   0x4   :  { %12 = vsyncpa [#allocation7], 0 }
   0x5   :  { %14 = vsyncpa [#allocation7 + $0x1], 0  ;;  %s2636_s12 = smov 0   ;;  %s2638_s13 = smov 0  }
   0x6   :  { %s2640_s14 = smov 0   ;;  %s2642_s15 = smov 0  }
   0x7   :  { %s2644_s16 = smov 0   ;;  %s2646_s17 = smov 0  }
   0x8   :  { %s2648_s18 = smov 0   ;;  %s2650_s19 = smov 0  }
   0x9   :  { %s2652_s20 = smov 0   ;;  %s2654_s21 = smov 0  }
   0xa   :  { %s2656_s22 = smov 0  }
   0xb LB: > { %3720 = sst [smem:[#allocation10_spill]] %s2603_s20  ;;  %s2061_s23 = sadd.s32 4294967295, %s2611_s22   ;;  %s2611_s22 = sphi %s2656_s22, %s20_s22   ;;  %s2607_s21 = sphi %s2654_s21, %s3738_s21   ;;  %s2603_s20 = sphi %s2652_s20, %s3737_s20   ;;  %s2599_s19 = sphi %s2650_s19, %s3736_s19   ;;  %s2595_s18 = sphi %s2648_s18, %s3735_s18   ;;  %s2591_s17 = sphi %s2646_s17, %s3744_s17   ;;  %s2587_s16 = sphi %s2644_s16, %s3743_s16   ;;  %s2583_s15 = sphi %s2642_s15, %s3742_s15   ;;  %s2579_s14 = sphi %s2640_s14, %s3741_s14   ;;  %s2575_s13 = sphi %s2638_s13, %s3740_s13   ;;  %s2571_s12 = sphi %s2636_s12, %s3739_s12  }
   0xc   : > { %3721 = sst [smem:[#allocation11_spill]] %s2607_s21  ;;  %s2062_s24 = sadd.s32 4294967294, %s2611_s22  }
   0xd   : > { %s29_s25 = sadd.s32 1, %s2603_s20  ;;  %s32_s26 = sadd.s32 1, %s2607_s21 }
   0xe   : > { %p30_p0 = scmp.ge.s32.totalorder %s29_s25, 2  ;;  %s41_s27 = sadd.s32 1, %s2591_s17 }
   0xf   : > { %p48_p1 = scmp.ne.s32.totalorder %s2591_s17, %s2587_s16  ;;  %p49_p2 = scmp.eq.s32.totalorder %s2611_s22, 0 }
  0x10   : > { %s3746_s25 = smov (%p30_p0, %s29_s25), 0  ;;  %s3748_s26 = smov (!%p30_p0, %s32_s26), %s2607_s21 }
  0x11   : > { %3722 = sst [smem:[#allocation12_spill]] %s3746_s25  ;;  %s37_s28 = ssub.s32 %s2603_s20, %s3746_s25 }
  0x12   : > { %p2704_p3 = por %p49_p2, %p48_p1  ;;  %p34_p4 = scmp.ge.s32.totalorder %s3748_s26, 2 }
  0x13   : > { %p2708_p5 = scmp.eq.s32.totalorder %s2061_s23, 3  ;;  %p106_p6 = scmp.ne.s32.totalorder %s2587_s16, %s2583_s15 }
  0x14   : > { %p2714_p7 = scmp.eq.s32.totalorder %s2062_s24, 3  ;;  %s3750_s26 = smov (%p34_p4, %s3748_s26), 0 }
  0x15   : > { %3726 = sst [smem:[#allocation13_spill]] %s3750_s26  ;;  %p2722_p8 = por %p2708_p5, %p48_p1 }
  0x16   : > { %p2728_p9 = por %p2714_p7, %p106_p6  ;;  %s36_s7 = ssub.s32 %s2607_s21, %s3750_s26 }
  0x17   : > { %s116_s8 = sadd.s32 1, %s2579_s14  ;;  %s38_s9 = sor.u32 %s37_s28, %s36_s7 }
  0x18   : > { %p114_p10 = scmp.eq.s32.totalorder %s36_s7, 0  ;;  %p39_p11 = scmp.eq.s32.totalorder %s38_s9, 0 }
  0x19   : > { %p126_p12 = scmp.ne.s32.totalorder %s2579_s14, %s2575_s13  ;;  %p132_p0 = scmp.ne.s32.totalorder %s2575_s13, %s2571_s12 }
  0x1a   : > { %s2738_s10 = scalar_select %p114_p10, %s2579_s14, %s116_s8  }
  0x1b   : > { %s2741_s11 = scalar_select %p39_p11, %s2591_s17, %s41_s27  }
  0x1c   : > { %p2745_p13 = por %p126_p12, %p2708_p5  ;;  %p2753_p1 = por %p132_p0, %p2714_p7 }
  0x1d   : > { %3729 = sst [smem:[#allocation14_spill]] %s2741_s11  ;;  %p2064_p2 = scmp.ge.s32.totalorder %s2611_s22, 4 }
  0x1f   : > { %152 = sbr.rel (%p2064_p2) target bundleno = 117 (0x75), region = 20 }
  0x24   : > { %155 = sbr.rel (!%p2704_p3) target bundleno = 117 (0x75), region = 24  ;;  %s157_s27 = sand.u32 (%p2704_p3), 1, %s2591_s17  }
  0x25   : > { %s2355_s28 = smul.u32 (%p2704_p3), 24, %s2603_s20  ;;  %s3732_s0 = sld [smem:[#allocation15_spill]] (%p2704_p3) }
  0x26   : > { %s2354_s30 = smul.u32 (%p2704_p3), 576, %s157_s27 }
  0x27   : > { %s2356_s7 = smul.u32 (%p2704_p3), 48, %s2607_s21 }
  0x28   : > { %s2771_s29 = scalar_lea.vmem (%p2704_p3), [#allocation3], %s2354_s30 }
  0x29   : > { %s163_s8 = sadd.s32 %s2356_s7, %s2355_s28 }
  0x2a   : > { %s2067_s9 = sshll.u32 %s163_s8, 3 }
  0x2b   : > { %s2766_s25 = scalar_lea.vmem %s3732_s0, %s2067_s9 }
  0x2c   : > { %v336_v0 = vld [vmem:[%s2766_s25] sm:$0xff]  ;;  %v338_v1 = vld [vmem:[%s2766_s25 + $0x8] sm:$0xff]  ;;  %v340_v2 = vld [vmem:[%s2766_s25 + $0x10] sm:$0xff] }
  0x2d   : > { %337 = vst [vmem:[%s2771_s29] sm:$0xff] %v336_v0  ;;  %v342_v3 = vld [vmem:[%s2766_s25 + $0x18] sm:$0xff]  ;;  %v344_v4 = vld [vmem:[%s2766_s25 + $0x20] sm:$0xff]  ;;  %v346_v5 = vld [vmem:[%s2766_s25 + $0x28] sm:$0xff] }
  0x2e   : > { %339 = vst [vmem:[%s2771_s29 + $0x8] sm:$0xff] %v338_v1  ;;  %v348_v6 = vld [vmem:[%s2766_s25 + $0x30] sm:$0xff]  ;;  %v350_v7 = vld [vmem:[%s2766_s25 + $0x38] sm:$0xff]  ;;  %v352_v8 = vld [vmem:[%s2766_s25 + $0x40] sm:$0xff] }
  0x2f   : > { %341 = vst [vmem:[%s2771_s29 + $0x10] sm:$0xff] %v340_v2  ;;  %v354_v9 = vld [vmem:[%s2766_s25 + $0x48] sm:$0xff]  ;;  %v356_v10 = vld [vmem:[%s2766_s25 + $0x50] sm:$0xff]  ;;  %v358_v11 = vld [vmem:[%s2766_s25 + $0x58] sm:$0xff] }
  0x30   : > { %343 = vst [vmem:[%s2771_s29 + $0x18] sm:$0xff] %v342_v3  ;;  %v360_v12 = vld [vmem:[%s2766_s25 + $0x60] sm:$0xff]  ;;  %v362_v13 = vld [vmem:[%s2766_s25 + $0x68] sm:$0xff]  ;;  %v364_v14 = vld [vmem:[%s2766_s25 + $0x70] sm:$0xff] }
  0x31   : > { %345 = vst [vmem:[%s2771_s29 + $0x20] sm:$0xff] %v344_v4  ;;  %v366_v15 = vld [vmem:[%s2766_s25 + $0x78] sm:$0xff]  ;;  %v368_v16 = vld [vmem:[%s2766_s25 + $0x80] sm:$0xff]  ;;  %v370_v17 = vld [vmem:[%s2766_s25 + $0x88] sm:$0xff] }
  0x32   : > { %347 = vst [vmem:[%s2771_s29 + $0x28] sm:$0xff] %v346_v5  ;;  %v372_v18 = vld [vmem:[%s2766_s25 + $0x90] sm:$0xff]  ;;  %v374_v19 = vld [vmem:[%s2766_s25 + $0x98] sm:$0xff]  ;;  %v376_v20 = vld [vmem:[%s2766_s25 + $0xa0] sm:$0xff] }
  0x33   : > { %349 = vst [vmem:[%s2771_s29 + $0x30] sm:$0xff] %v348_v6  ;;  %v378_v21 = vld [vmem:[%s2766_s25 + $0xa8] sm:$0xff]  ;;  %v380_v22 = vld [vmem:[%s2766_s25 + $0xb0] sm:$0xff]  ;;  %v382_v23 = vld [vmem:[%s2766_s25 + $0xb8] sm:$0xff] }
  0x34   : > { %351 = vst [vmem:[%s2771_s29 + $0x38] sm:$0xff] %v350_v7  ;;  %v384_v24 = vld [vmem:[%s2766_s25 + $0x300] sm:$0xff]  ;;  %v386_v25 = vld [vmem:[%s2766_s25 + $0x308] sm:$0xff]  ;;  %v388_v26 = vld [vmem:[%s2766_s25 + $0x310] sm:$0xff] }
  0x35   : > { %353 = vst [vmem:[%s2771_s29 + $0x40] sm:$0xff] %v352_v8  ;;  %v390_v27 = vld [vmem:[%s2766_s25 + $0x318] sm:$0xff]  ;;  %v392_v28 = vld [vmem:[%s2766_s25 + $0x320] sm:$0xff]  ;;  %v394_v29 = vld [vmem:[%s2766_s25 + $0x328] sm:$0xff] }
  0x36   : > { %355 = vst [vmem:[%s2771_s29 + $0x48] sm:$0xff] %v354_v9  ;;  %v396_v30 = vld [vmem:[%s2766_s25 + $0x330] sm:$0xff]  ;;  %v398_v31 = vld [vmem:[%s2766_s25 + $0x338] sm:$0xff]  ;;  %v400_v32 = vld [vmem:[%s2766_s25 + $0x340] sm:$0xff] }
  0x37   : > { %357 = vst [vmem:[%s2771_s29 + $0x50] sm:$0xff] %v356_v10  ;;  %v402_v33 = vld [vmem:[%s2766_s25 + $0x348] sm:$0xff]  ;;  %v404_v34 = vld [vmem:[%s2766_s25 + $0x350] sm:$0xff]  ;;  %v406_v35 = vld [vmem:[%s2766_s25 + $0x358] sm:$0xff] }
  0x38   : > { %359 = vst [vmem:[%s2771_s29 + $0x58] sm:$0xff] %v358_v11  ;;  %v408_v36 = vld [vmem:[%s2766_s25 + $0x360] sm:$0xff]  ;;  %v410_v37 = vld [vmem:[%s2766_s25 + $0x368] sm:$0xff]  ;;  %v412_v38 = vld [vmem:[%s2766_s25 + $0x370] sm:$0xff] }
  0x39   : > { %361 = vst [vmem:[%s2771_s29 + $0x60] sm:$0xff] %v360_v12  ;;  %v414_v39 = vld [vmem:[%s2766_s25 + $0x378] sm:$0xff]  ;;  %v416_v40 = vld [vmem:[%s2766_s25 + $0x380] sm:$0xff]  ;;  %v418_v41 = vld [vmem:[%s2766_s25 + $0x388] sm:$0xff] }
  0x3a   : > { %363 = vst [vmem:[%s2771_s29 + $0x68] sm:$0xff] %v362_v13  ;;  %v420_v42 = vld [vmem:[%s2766_s25 + $0x390] sm:$0xff]  ;;  %v422_v43 = vld [vmem:[%s2766_s25 + $0x398] sm:$0xff]  ;;  %v424_v44 = vld [vmem:[%s2766_s25 + $0x3a0] sm:$0xff] }
  0x3b   : > { %365 = vst [vmem:[%s2771_s29 + $0x70] sm:$0xff] %v364_v14  ;;  %v426_v45 = vld [vmem:[%s2766_s25 + $0x3a8] sm:$0xff]  ;;  %v428_v46 = vld [vmem:[%s2766_s25 + $0x3b0] sm:$0xff]  ;;  %v430_v47 = vld [vmem:[%s2766_s25 + $0x3b8] sm:$0xff] }
  0x3c   : > { %367 = vst [vmem:[%s2771_s29 + $0x78] sm:$0xff] %v366_v15  ;;  %v432_v48 = vld [vmem:[%s2766_s25 + $0x600] sm:$0xff]  ;;  %v434_v49 = vld [vmem:[%s2766_s25 + $0x608] sm:$0xff]  ;;  %v436_v50 = vld [vmem:[%s2766_s25 + $0x610] sm:$0xff] }
  0x3d   : > { %369 = vst [vmem:[%s2771_s29 + $0x80] sm:$0xff] %v368_v16  ;;  %v438_v51 = vld [vmem:[%s2766_s25 + $0x618] sm:$0xff]  ;;  %v440_v52 = vld [vmem:[%s2766_s25 + $0x620] sm:$0xff]  ;;  %v442_v53 = vld [vmem:[%s2766_s25 + $0x628] sm:$0xff] }
  0x3e   : > { %371 = vst [vmem:[%s2771_s29 + $0x88] sm:$0xff] %v370_v17  ;;  %v444_v54 = vld [vmem:[%s2766_s25 + $0x630] sm:$0xff]  ;;  %v446_v55 = vld [vmem:[%s2766_s25 + $0x638] sm:$0xff]  ;;  %v448_v56 = vld [vmem:[%s2766_s25 + $0x640] sm:$0xff] }
  0x3f   : > { %373 = vst [vmem:[%s2771_s29 + $0x90] sm:$0xff] %v372_v18  ;;  %v450_v57 = vld [vmem:[%s2766_s25 + $0x648] sm:$0xff]  ;;  %v452_v58 = vld [vmem:[%s2766_s25 + $0x650] sm:$0xff]  ;;  %v454_v59 = vld [vmem:[%s2766_s25 + $0x658] sm:$0xff] }
  0x40   : > { %375 = vst [vmem:[%s2771_s29 + $0x98] sm:$0xff] %v374_v19  ;;  %v456_v60 = vld [vmem:[%s2766_s25 + $0x660] sm:$0xff]  ;;  %v458_v61 = vld [vmem:[%s2766_s25 + $0x668] sm:$0xff]  ;;  %v460_v62 = vld [vmem:[%s2766_s25 + $0x670] sm:$0xff] }
  0x41   : > { %377 = vst [vmem:[%s2771_s29 + $0xa0] sm:$0xff] %v376_v20  ;;  %v462_v63 = vld [vmem:[%s2766_s25 + $0x678] sm:$0xff]  ;;  %v464_v0 = vld [vmem:[%s2766_s25 + $0x680] sm:$0xff]  ;;  %v466_v1 = vld [vmem:[%s2766_s25 + $0x688] sm:$0xff] }
  0x42   : > { %379 = vst [vmem:[%s2771_s29 + $0xa8] sm:$0xff] %v378_v21  ;;  %v468_v2 = vld [vmem:[%s2766_s25 + $0x690] sm:$0xff]  ;;  %v470_v3 = vld [vmem:[%s2766_s25 + $0x698] sm:$0xff]  ;;  %v472_v4 = vld [vmem:[%s2766_s25 + $0x6a0] sm:$0xff] }
  0x43   : > { %381 = vst [vmem:[%s2771_s29 + $0xb0] sm:$0xff] %v380_v22  ;;  %v474_v5 = vld [vmem:[%s2766_s25 + $0x6a8] sm:$0xff]  ;;  %v476_v6 = vld [vmem:[%s2766_s25 + $0x6b0] sm:$0xff]  ;;  %v478_v7 = vld [vmem:[%s2766_s25 + $0x6b8] sm:$0xff] }
  0x44   : > { %383 = vst [vmem:[%s2771_s29 + $0xb8] sm:$0xff] %v382_v23 }
  0x45   : > { %385 = vst [vmem:[%s2771_s29 + $0xc0] sm:$0xff] %v384_v24 }
  0x46   : > { %387 = vst [vmem:[%s2771_s29 + $0xc8] sm:$0xff] %v386_v25 }
  0x47   : > { %389 = vst [vmem:[%s2771_s29 + $0xd0] sm:$0xff] %v388_v26 }
  0x48   : > { %391 = vst [vmem:[%s2771_s29 + $0xd8] sm:$0xff] %v390_v27 }
  0x49   : > { %393 = vst [vmem:[%s2771_s29 + $0xe0] sm:$0xff] %v392_v28 }
  0x4a   : > { %395 = vst [vmem:[%s2771_s29 + $0xe8] sm:$0xff] %v394_v29 }
  0x4b   : > { %397 = vst [vmem:[%s2771_s29 + $0xf0] sm:$0xff] %v396_v30 }
  0x4c   : > { %399 = vst [vmem:[%s2771_s29 + $0xf8] sm:$0xff] %v398_v31 }
  0x4d   : > { %401 = vst [vmem:[%s2771_s29 + $0x100] sm:$0xff] %v400_v32 }
  0x4e   : > { %403 = vst [vmem:[%s2771_s29 + $0x108] sm:$0xff] %v402_v33 }
  0x4f   : > { %405 = vst [vmem:[%s2771_s29 + $0x110] sm:$0xff] %v404_v34 }
  0x50   : > { %407 = vst [vmem:[%s2771_s29 + $0x118] sm:$0xff] %v406_v35 }
  0x51   : > { %409 = vst [vmem:[%s2771_s29 + $0x120] sm:$0xff] %v408_v36 }
  0x52   : > { %411 = vst [vmem:[%s2771_s29 + $0x128] sm:$0xff] %v410_v37 }
  0x53   : > { %413 = vst [vmem:[%s2771_s29 + $0x130] sm:$0xff] %v412_v38 }
  0x54   : > { %415 = vst [vmem:[%s2771_s29 + $0x138] sm:$0xff] %v414_v39 }
  0x55   : > { %417 = vst [vmem:[%s2771_s29 + $0x140] sm:$0xff] %v416_v40 }
  0x56   : > { %419 = vst [vmem:[%s2771_s29 + $0x148] sm:$0xff] %v418_v41 }
  0x57   : > { %421 = vst [vmem:[%s2771_s29 + $0x150] sm:$0xff] %v420_v42 }
  0x58   : > { %423 = vst [vmem:[%s2771_s29 + $0x158] sm:$0xff] %v422_v43 }
  0x59   : > { %425 = vst [vmem:[%s2771_s29 + $0x160] sm:$0xff] %v424_v44 }
  0x5a   : > { %427 = vst [vmem:[%s2771_s29 + $0x168] sm:$0xff] %v426_v45 }
  0x5b   : > { %429 = vst [vmem:[%s2771_s29 + $0x170] sm:$0xff] %v428_v46 }
  0x5c   : > { %431 = vst [vmem:[%s2771_s29 + $0x178] sm:$0xff] %v430_v47 }
  0x5d   : > { %433 = vst [vmem:[%s2771_s29 + $0x180] sm:$0xff] %v432_v48 }
  0x5e   : > { %435 = vst [vmem:[%s2771_s29 + $0x188] sm:$0xff] %v434_v49 }
  0x5f   : > { %437 = vst [vmem:[%s2771_s29 + $0x190] sm:$0xff] %v436_v50 }
  0x60   : > { %439 = vst [vmem:[%s2771_s29 + $0x198] sm:$0xff] %v438_v51 }
  0x61   : > { %441 = vst [vmem:[%s2771_s29 + $0x1a0] sm:$0xff] %v440_v52 }
  0x62   : > { %443 = vst [vmem:[%s2771_s29 + $0x1a8] sm:$0xff] %v442_v53 }
  0x63   : > { %445 = vst [vmem:[%s2771_s29 + $0x1b0] sm:$0xff] %v444_v54 }
  0x64   : > { %447 = vst [vmem:[%s2771_s29 + $0x1b8] sm:$0xff] %v446_v55 }
  0x65   : > { %449 = vst [vmem:[%s2771_s29 + $0x1c0] sm:$0xff] %v448_v56 }
  0x66   : > { %451 = vst [vmem:[%s2771_s29 + $0x1c8] sm:$0xff] %v450_v57 }
  0x67   : > { %453 = vst [vmem:[%s2771_s29 + $0x1d0] sm:$0xff] %v452_v58 }
  0x68   : > { %455 = vst [vmem:[%s2771_s29 + $0x1d8] sm:$0xff] %v454_v59 }
  0x69   : > { %457 = vst [vmem:[%s2771_s29 + $0x1e0] sm:$0xff] %v456_v60 }
  0x6a   : > { %459 = vst [vmem:[%s2771_s29 + $0x1e8] sm:$0xff] %v458_v61 }
  0x6b   : > { %461 = vst [vmem:[%s2771_s29 + $0x1f0] sm:$0xff] %v460_v62 }
  0x6c   : > { %463 = vst [vmem:[%s2771_s29 + $0x1f8] sm:$0xff] %v462_v63 }
  0x6d   : > { %465 = vst [vmem:[%s2771_s29 + $0x200] sm:$0xff] %v464_v0 }
  0x6e   : > { %467 = vst [vmem:[%s2771_s29 + $0x208] sm:$0xff] %v466_v1 }
  0x6f   : > { %469 = vst [vmem:[%s2771_s29 + $0x210] sm:$0xff] %v468_v2 }
  0x70   : > { %471 = vst [vmem:[%s2771_s29 + $0x218] sm:$0xff] %v470_v3 }
  0x71   : > { %473 = vst [vmem:[%s2771_s29 + $0x220] sm:$0xff] %v472_v4 }
  0x72   : > { %475 = vst [vmem:[%s2771_s29 + $0x228] sm:$0xff] %v474_v5 }
  0x73   : > { %477 = vst [vmem:[%s2771_s29 + $0x230] sm:$0xff] %v476_v6 }
  0x74   : > { %479 = vst [vmem:[%s2771_s29 + $0x238] sm:$0xff] %v478_v7 }
  0x75 PF: > { %p2068_p3 = scmp.ge.s32.totalorder %s2611_s22, 1  ;;  %p484_p4 = scmp.lt.s32.totalorder %s2611_s22, 5 }
  0x77   : > { %p485_p5 = pnand %p2068_p3, %p484_p4 }
  0x78   : > { %s2917_s26 = sand.u32 (!%p485_p5), 1, %s2587_s16   ;;  %s3717_s27 = sand.u32 (!%p485_p5), 1, %s2575_s13  }
  0x79   : > { %488 = sbr.rel (%p485_p5) target bundleno = 610 (0x262), region = 62  ;;  %s2069_s28 = sshll.u32 (!%p485_p5), %s2917_s26, 7 }
  0x7a   : > { %s2357_s25 = smul.u32 (!%p485_p5), 576, %s2917_s26  ;;  %s2070_s30 = sshll.u32 (!%p485_p5), %s3717_s27, 1 }
  0x7b   : > { %s2926_s8 = scalar_lea.vmem (!%p485_p5), [#allocation4], %s2069_s28  ;;  %s2928_s9 = scalar_lea.vmem (!%p485_p5), [#allocation6], %s2070_s30 }
  0x7c   : > { %s2924_s7 = scalar_lea.vmem (!%p485_p5), [#allocation3], %s2357_s25  ;;  %p2071_p6 = scmp.ne.s32.totalorder (!%p485_p5), %s2595_s18, 0 }
  0x7e   : > { %524 = sbr.rel (%p2071_p6) target bundleno = 133 (0x85), region = 70 }
  0x83   : > { %v2613_v8 = vmov 0.0  }
  0x84   : > { %525 = vst [vmem:[%s2928_s9] sm:$0x3] %v2613_v8 }
  0x85 PF: > { %v557_v9 = vld [vmem:[%s3711_s1 + $0x78] sm:$0xff]  ;;  %v556_v10 = vld [vmem:[%s3711_s1 + $0x70] sm:$0xff]  ;;  %v555_v11 = vld [vmem:[%s3711_s1 + $0x68] sm:$0xff]  ;;  %s2300_s0 = sshll.u32 %s2599_s19, 5  ;;  %s1926_s25 = sshll.u32 %s2926_s8, 4  ;;  %s1927_s25 = int_to_ptr.vmem [resolvable:$true] %s1926_s25 }
  0x86   : > { %2306 = vmatpush.msra.mxu1 %v557_v9  ;;  %2307 = vmatpush.msra.mxu2 %v557_v9  ;;  %v554_v12 = vld [vmem:[%s3711_s1 + $0x60] sm:$0xff]  ;;  %v553_v13 = vld [vmem:[%s3711_s1 + $0x58] sm:$0xff]  ;;  %v552_v14 = vld [vmem:[%s3711_s1 + $0x50] sm:$0xff]  ;;  %s1906_s20 = scalar_lea.sflag [#allocation5], %s2917_s26 }
  0x87   : > { %2308 = vmatpush.msra.mxu3 %v557_v9  ;;  %558 = vmatpush.msra.mxu0 %v557_v9  ;;  %v551_v15 = vld [vmem:[%s3711_s1 + $0x48] sm:$0xff]  ;;  %v550_v16 = vld [vmem:[%s3711_s1 + $0x40] sm:$0xff]  ;;  %v549_v17 = vld [vmem:[%s3711_s1 + $0x38] sm:$0xff] }
  0x88   : > { %2309 = vmatpush.msra.mxu1 %v556_v10  ;;  %2310 = vmatpush.msra.mxu2 %v556_v10  ;;  %v548_v18 = vld [vmem:[%s3711_s1 + $0x30] sm:$0xff]  ;;  %v547_v19 = vld [vmem:[%s3711_s1 + $0x28] sm:$0xff]  ;;  %v546_v20 = vld [vmem:[%s3711_s1 + $0x20] sm:$0xff] }
  0x89   : > { %2311 = vmatpush.msra.mxu3 %v556_v10  ;;  %559 = vmatpush.msra.mxu0 %v556_v10  ;;  %v545_v21 = vld [vmem:[%s3711_s1 + $0x18] sm:$0xff]  ;;  %v544_v22 = vld [vmem:[%s3711_s1 + $0x10] sm:$0xff]  ;;  %v543_v23 = vld [vmem:[%s3711_s1 + $0x8] sm:$0xff] }
  0x8a   : > { %2312 = vmatpush.msra.mxu1 %v555_v11  ;;  %2313 = vmatpush.msra.mxu2 %v555_v11  ;;  %v542_v24 = vld [vmem:[%s3711_s1] sm:$0xff]  ;;  %v530_v25 = vld [vmem:[%s2924_s7 + $0x30] sm:$0xff]  ;;  %v2103_v27 = vld [vmem:[%s3711_s1 + $0x178] sm:$0xff] }
  0x8b   : > { %2314 = vmatpush.msra.mxu3 %v555_v11  ;;  %560 = vmatpush.msra.mxu0 %v555_v11  ;;  %v534_v26 = vld [vmem:[%s2924_s7 + $0x60] sm:$0xff]  ;;  %v2087_v28 = vld [vmem:[%s3711_s1 + $0xf8] sm:$0xff]  ;;  %v538_v29 = vld [vmem:[%s2924_s7 + $0x90] sm:$0xff] }
  0x8c   : > { %2315 = vmatpush.msra.mxu1 %v554_v12  ;;  %2316 = vmatpush.msra.mxu2 %v554_v12  ;;  %v2102_v30 = vld [vmem:[%s3711_s1 + $0x170] sm:$0xff]  ;;  %v2135_v31 = vld [vmem:[%s3711_s1 + $0x1f8] sm:$0xff]  ;;  %v2101_v33 = vld [vmem:[%s3711_s1 + $0x168] sm:$0xff] }
  0x8d   : > { %2317 = vmatpush.msra.mxu3 %v554_v12  ;;  %561 = vmatpush.msra.mxu0 %v554_v12  ;;  %v2086_v32 = vld [vmem:[%s3711_s1 + $0xf0] sm:$0xff]  ;;  %v2085_v35 = vld [vmem:[%s3711_s1 + $0xe8] sm:$0xff]  ;;  %v526_v36 = vld [vmem:[%s2924_s7] sm:$0xff] }
  0x8e   : > { %2318 = vmatpush.msra.mxu1 %v553_v13  ;;  %2319 = vmatpush.msra.mxu2 %v553_v13  ;;  %v2134_v34 = vld [vmem:[%s3711_s1 + $0x1f0] sm:$0xff]  ;;  %v2100_v37 = vld [vmem:[%s3711_s1 + $0x160] sm:$0xff]  ;;  %v2133_v38 = vld [vmem:[%s3711_s1 + $0x1e8] sm:$0xff] }
  0x8f   : > { %2320 = vmatpush.msra.mxu3 %v553_v13  ;;  %562 = vmatpush.msra.mxu0 %v553_v13  ;;  %v2084_v39 = vld [vmem:[%s3711_s1 + $0xe0] sm:$0xff]  ;;  %v535_v40 = vld [vmem:[%s2924_s7 + $0x68] sm:$0xff]  ;;  %v531_v41 = vld [vmem:[%s2924_s7 + $0x38] sm:$0xff] }
  0x90   : > { %2321 = vmatpush.msra.mxu1 %v552_v14  ;;  %2322 = vmatpush.msra.mxu2 %v552_v14  ;;  %v2099_v42 = vld [vmem:[%s3711_s1 + $0x158] sm:$0xff]  ;;  %v2132_v43 = vld [vmem:[%s3711_s1 + $0x1e0] sm:$0xff]  ;;  %v2098_v46 = vld [vmem:[%s3711_s1 + $0x150] sm:$0xff] }
  0x91   : > { %2323 = vmatpush.msra.mxu3 %v552_v14  ;;  %563 = vmatpush.msra.mxu0 %v552_v14  ;;  %v2083_v44 = vld [vmem:[%s3711_s1 + $0xd8] sm:$0xff]  ;;  %v2082_v49 = vld [vmem:[%s3711_s1 + $0xd0] sm:$0xff]  ;;  %v2097_v50 = vld [vmem:[%s3711_s1 + $0x148] sm:$0xff] }
  0x92   : > { %2324 = vmatpush.msra.mxu1 %v551_v15  ;;  %2325 = vmatpush.msra.mxu2 %v551_v15  ;;  %v539_v45 = vld [vmem:[%s2924_s7 + $0x98] sm:$0xff]  ;;  %v2130_v51 = vld [vmem:[%s3711_s1 + $0x1d0] sm:$0xff]  ;;  %v2081_v53 = vld [vmem:[%s3711_s1 + $0xc8] sm:$0xff] }
  0x93   : > { %2326 = vmatpush.msra.mxu3 %v551_v15  ;;  %564 = vmatpush.msra.mxu0 %v551_v15  ;;  %v2131_v47 = vld [vmem:[%s3711_s1 + $0x1d8] sm:$0xff]  ;;  %v2166_v52 = vld [vmem:[%s3711_s1 + $0x270] sm:$0xff]  ;;  %v2096_v54 = vld [vmem:[%s3711_s1 + $0x140] sm:$0xff] }
  0x94   : > { %2327 = vmatpush.msra.mxu1 %v550_v16  ;;  %2328 = vmatpush.msra.mxu2 %v550_v16  ;;  %v2167_v48 = vld [vmem:[%s3711_s1 + $0x278] sm:$0xff]  ;;  %v2129_v55 = vld [vmem:[%s3711_s1 + $0x1c8] sm:$0xff]  ;;  %v2080_v57 = vld [vmem:[%s3711_s1 + $0xc0] sm:$0xff] }
  0x95   : > { %2329 = vmatpush.msra.mxu3 %v550_v16  ;;  %565 = vmatpush.msra.mxu0 %v550_v16  ;;  %v2165_v56 = vld [vmem:[%s3711_s1 + $0x268] sm:$0xff]  ;;  %v536_v58 = vld [vmem:[%s2924_s7 + $0x78] sm:$0xff]  ;;  %v2128_v61 = vld [vmem:[%s3711_s1 + $0x1c0] sm:$0xff] }
  0x96   : > { %2330 = vmatpush.msra.mxu1 %v549_v17  ;;  %2331 = vmatpush.msra.mxu2 %v549_v17  ;;  %v532_v59 = vld [vmem:[%s2924_s7 + $0x48] sm:$0xff]  ;;  %v2095_v60 = vld [vmem:[%s3711_s1 + $0x138] sm:$0xff]  ;;  %v2164_v62 = vld [vmem:[%s3711_s1 + $0x260] sm:$0xff] }
  0x97   : > { %2332 = vmatpush.msra.mxu3 %v549_v17  ;;  %566 = vmatpush.msra.mxu0 %v549_v17  ;;  %v2079_v63 = vld [vmem:[%s3711_s1 + $0xb8] sm:$0xff]  ;;  %v527_v0 = vld [vmem:[%s2924_s7 + $0x8] sm:$0xff]  ;;  %v2094_v2 = vld [vmem:[%s3711_s1 + $0x130] sm:$0xff] }
  0x98   : > { %2333 = vmatpush.msra.mxu1 %v548_v18  ;;  %2334 = vmatpush.msra.mxu2 %v548_v18  ;;  %v540_v1 = vld [vmem:[%s2924_s7 + $0xa8] sm:$0xff]  ;;  %v2127_v3 = vld [vmem:[%s3711_s1 + $0x1b8] sm:$0xff]  ;;  %v2078_v5 = vld [vmem:[%s3711_s1 + $0xb0] sm:$0xff] }
  0x99   : > { %2335 = vmatpush.msra.mxu3 %v548_v18  ;;  %567 = vmatpush.msra.mxu0 %v548_v18  ;;  %v2163_v4 = vld [vmem:[%s3711_s1 + $0x258] sm:$0xff]  ;;  %v2093_v6 = vld [vmem:[%s3711_s1 + $0x128] sm:$0xff]  ;;  %v2126_v7 = vld [vmem:[%s3711_s1 + $0x1b0] sm:$0xff] }
  0x9a   : > { %2336 = vmatpush.msra.mxu1 %v547_v19  ;;  %2337 = vmatpush.msra.mxu2 %v547_v19  ;;  %v2162_v8 = vld [vmem:[%s3711_s1 + $0x250] sm:$0xff]  ;;  %v2077_v9 = vld [vmem:[%s3711_s1 + $0xa8] sm:$0xff]  ;;  %v2092_v10 = vld [vmem:[%s3711_s1 + $0x120] sm:$0xff] }
  0x9b   : > { %2338 = vmatpush.msra.mxu3 %v547_v19  ;;  %568 = vmatpush.msra.mxu0 %v547_v19  ;;  %v2125_v11 = vld [vmem:[%s3711_s1 + $0x1a8] sm:$0xff]  ;;  %v2076_v13 = vld [vmem:[%s3711_s1 + $0xa0] sm:$0xff]  ;;  %v533_v15 = vld [vmem:[%s2924_s7 + $0x50] sm:$0xff] }
  0x9c   : > { %2339 = vmatpush.msra.mxu1 %v546_v20  ;;  %2340 = vmatpush.msra.mxu2 %v546_v20  ;;  %v2161_v12 = vld [vmem:[%s3711_s1 + $0x248] sm:$0xff]  ;;  %v537_v14 = vld [vmem:[%s2924_s7 + $0x80] sm:$0xff]  ;;  %v2091_v16 = vld [vmem:[%s3711_s1 + $0x118] sm:$0xff] }
  0x9d   : > { %2341 = vmatpush.msra.mxu3 %v546_v20  ;;  %569 = vmatpush.msra.mxu0 %v546_v20  ;;  %v2124_v17 = vld [vmem:[%s3711_s1 + $0x1a0] sm:$0xff]  ;;  %v2075_v19 = vld [vmem:[%s3711_s1 + $0x98] sm:$0xff] }
  0x9e   : > { %2342 = vmatpush.msra.mxu1 %v545_v21  ;;  %2343 = vmatpush.msra.mxu2 %v545_v21  ;;  %v2160_v18 = vld [vmem:[%s3711_s1 + $0x240] sm:$0xff]  ;;  %v528_v20 = vld [vmem:[%s2924_s7 + $0x18] sm:$0xff] }
  0x9f   : > { %2344 = vmatpush.msra.mxu3 %v545_v21  ;;  %570 = vmatpush.msra.mxu0 %v545_v21  ;;  %v541_v21 = vld [vmem:[%s2924_s7 + $0xb0] sm:$0xff] }
  0xa0   : > { %2345 = vmatpush.msra.mxu1 %v544_v22  ;;  %2346 = vmatpush.msra.mxu2 %v544_v22 }
  0xa1   : > { %2347 = vmatpush.msra.mxu3 %v544_v22  ;;  %571 = vmatpush.msra.mxu0 %v544_v22  ;;  %v2090_v22 = vld [vmem:[%s3711_s1 + $0x110] sm:$0xff] }
  0xa2   : > { %2348 = vmatpush.msra.mxu1 %v543_v23  ;;  %2349 = vmatpush.msra.mxu2 %v543_v23 }
  0xa3   : > { %2350 = vmatpush.msra.mxu3 %v543_v23  ;;  %572 = vmatpush.msra.mxu0 %v543_v23  ;;  %v2123_v23 = vld [vmem:[%s3711_s1 + $0x198] sm:$0xff] }
  0xa4   : > { %2351 = vmatpush.msra.mxu1 %v542_v24  ;;  %2352 = vmatpush.msra.mxu2 %v542_v24 }
  0xa5   : > { %586 = vmatmul.f32.vlgmr.msra.gmra.mxu1 %v530_v25  ;;  %598 = vmatmul.f32.vlgmr.msra.gmra.mxu2 %v534_v26  ;;  %v2074_v25 = vld [vmem:[%s3711_s1 + $0x90] sm:$0xff]  ;;  %v2089_v26 = vld [vmem:[%s3711_s1 + $0x108] sm:$0xff] }
  0xa6   : > { %818 = vmatpush.msrb.mxu2 %v2103_v27  ;;  %2353 = vmatpush.msra.mxu3 %v542_v24  ;;  %v2122_v27 = vld [vmem:[%s3711_s1 + $0x190] sm:$0xff] }
  0xa7   : > { %672 = vmatpush.msrb.mxu1 %v2087_v28  ;;  %610 = vmatmul.f32.vlgmr.msra.gmra.mxu3 %v538_v29  ;;  %v2158_v28 = vld [vmem:[%s3711_s1 + $0x230] sm:$0xff]  ;;  %v2073_v29 = vld [vmem:[%s3711_s1 + $0x88] sm:$0xff] }
  0xa8   : > { %819 = vmatpush.msrb.mxu2 %v2102_v30  ;;  %965 = vmatpush.msrb.mxu3 %v2135_v31  ;;  %v2088_v30 = vld [vmem:[%s3711_s1 + $0x100] sm:$0xff]  ;;  %v2121_v31 = vld [vmem:[%s3711_s1 + $0x188] sm:$0xff] }
  0xa9   : > { %673 = vmatpush.msrb.mxu1 %v2086_v32  ;;  %573 = vmatpush.msra.mxu0 %v542_v24  ;;  %v2159_v24 = vld [vmem:[%s3711_s1 + $0x238] sm:$0xff]  ;;  %v2157_v32 = vld [vmem:[%s3711_s1 + $0x228] sm:$0xff] }
  0xaa   : > { %820 = vmatpush.msrb.mxu2 %v2101_v33  ;;  %966 = vmatpush.msrb.mxu3 %v2134_v34  ;;  %v2072_v33 = vld [vmem:[%s3711_s1 + $0x80] sm:$0xff] }
  0xab   : > { %674 = vmatpush.msrb.mxu1 %v2085_v35  ;;  %574 = vmatmul.f32.vlgmr.msra.gmra.mxu0 %v526_v36  ;;  %v785_v34 = vld [vmem:[%s2924_s7 + $0x2] sm:$0xff] }
  0xac   : > { %821 = vmatpush.msrb.mxu2 %v2100_v37  ;;  %967 = vmatpush.msrb.mxu3 %v2133_v38  ;;  %v639_v35 = vld [vmem:[%s2924_s7 + $0x1] sm:$0xff]  ;;  %v2231_v38 = vld [vmem:[%s3711_s1 + $0x378] sm:$0xff] }
  0xad   : > { %675 = vmatpush.msrb.mxu1 %v2084_v39  ;;  %601 = vmatmul.f32.gmra.mxu2 %v535_v40  ;;  %v2120_v36 = vld [vmem:[%s3711_s1 + $0x180] sm:$0xff] }
  0xae   : > { %589 = vmatmul.f32.gmra.mxu1 %v531_v41  ;;  %822 = vmatpush.msrb.mxu2 %v2099_v42  ;;  %v2156_v37 = vld [vmem:[%s3711_s1 + $0x220] sm:$0xff]  ;;  %v2155_v41 = vld [vmem:[%s3711_s1 + $0x218] sm:$0xff] }
  0xaf   : > { %968 = vmatpush.msrb.mxu3 %v2132_v43  ;;  %676 = vmatpush.msrb.mxu1 %v2083_v44  ;;  %v529_v39 = vld [vmem:[%s2924_s7 + $0x20] sm:$0xff]  ;;  %v2263_v42 = vld [vmem:[%s3711_s1 + $0x3f8] sm:$0xff]  ;;  %v2230_v44 = vld [vmem:[%s3711_s1 + $0x370] sm:$0xff] }
  0xb0   : > { %613 = vmatmul.f32.gmra.mxu3 %v539_v45  ;;  %823 = vmatpush.msrb.mxu2 %v2098_v46  ;;  %v2104_v40 = vld [vmem:[%s2924_s7 + $0xc0] sm:$0xff]  ;;  %v2199_v43 = vld [vmem:[%s3711_s1 + $0x2f8] sm:$0xff]  ;;  %v2154_v45 = vld [vmem:[%s3711_s1 + $0x210] sm:$0xff] }
  0xb1   : > { %969 = vmatpush.msrb.mxu3 %v2131_v47  ;;  %1111 = vmatpush.msrb.mxu0 %v2167_v48  ;;  %v2262_v46 = vld [vmem:[%s3711_s1 + $0x3f0] sm:$0xff]  ;;  %v2229_v48 = vld [vmem:[%s3711_s1 + $0x368] sm:$0xff] }
  0xb2   : > { %677 = vmatpush.msrb.mxu1 %v2082_v49  ;;  %824 = vmatpush.msrb.mxu2 %v2097_v50  ;;  %v2198_v47 = vld [vmem:[%s3711_s1 + $0x2f0] sm:$0xff]  ;;  %v2153_v49 = vld [vmem:[%s3711_s1 + $0x208] sm:$0xff] }
  0xb3   : > { %970 = vmatpush.msrb.mxu3 %v2130_v51  ;;  %1112 = vmatpush.msrb.mxu0 %v2166_v52  ;;  %v786_v50 = vld [vmem:[%s2924_s7 + $0xa] sm:$0xff] }
  0xb4   : > { %678 = vmatpush.msrb.mxu1 %v2081_v53  ;;  %825 = vmatpush.msrb.mxu2 %v2096_v54  ;;  %v640_v51 = vld [vmem:[%s2924_s7 + $0x9] sm:$0xff]  ;;  %v2152_v53 = vld [vmem:[%s3711_s1 + $0x200] sm:$0xff] }
  0xb5   : > { %971 = vmatpush.msrb.mxu3 %v2129_v55  ;;  %1113 = vmatpush.msrb.mxu0 %v2165_v56  ;;  %v2261_v52 = vld [vmem:[%s3711_s1 + $0x3e8] sm:$0xff] }
  0xb6   : > { %679 = vmatpush.msrb.mxu1 %v2080_v57  ;;  %604 = vmatmul.f32.gmra.mxu2 %v536_v58  ;;  %v2197_v54 = vld [vmem:[%s3711_s1 + $0x2e8] sm:$0xff]  ;;  %v2295_v57 = vld [vmem:[%s3711_s1 + $0x478] sm:$0xff]  ;;  %v2228_v58 = vld [vmem:[%s3711_s1 + $0x360] sm:$0xff] }
  0xb7   : > { %592 = vmatmul.f32.gmra.mxu1 %v532_v59  ;;  %826 = vmatpush.msrb.mxu2 %v2095_v60  ;;  %v2105_v55 = vld [vmem:[%s2924_s7 + $0xc8] sm:$0xff]  ;;  %v2260_v59 = vld [vmem:[%s3711_s1 + $0x3e0] sm:$0xff] }
  0xb8   : > { %972 = vmatpush.msrb.mxu3 %v2128_v61  ;;  %1114 = vmatpush.msrb.mxu0 %v2164_v62  ;;  %v2136_v56 = vld [vmem:[%s2924_s7 + $0xc1] sm:$0xff]  ;;  %v2294_v61 = vld [vmem:[%s3711_s1 + $0x470] sm:$0xff]  ;;  %v2227_v62 = vld [vmem:[%s3711_s1 + $0x358] sm:$0xff] }
  0xb9   : > { %680 = vmatpush.msrb.mxu1 %v2079_v63  ;;  %577 = vmatmul.f32.gmra.mxu0 %v527_v0  ;;  %v2196_v60 = vld [vmem:[%s3711_s1 + $0x2e0] sm:$0xff]  ;;  %v2259_v63 = vld [vmem:[%s3711_s1 + $0x3d8] sm:$0xff] }
  0xba   : > { %616 = vmatmul.f32.gmra.mxu3 %v540_v1  ;;  %827 = vmatpush.msrb.mxu2 %v2094_v2  ;;  %v2195_v0 = vld [vmem:[%s3711_s1 + $0x2d8] sm:$0xff]  ;;  %v2293_v2 = vld [vmem:[%s3711_s1 + $0x468] sm:$0xff] }
  0xbb   : > { %973 = vmatpush.msrb.mxu3 %v2127_v3  ;;  %1115 = vmatpush.msrb.mxu0 %v2163_v4  ;;  %v787_v1 = vld [vmem:[%s2924_s7 + $0x1a] sm:$0xff]  ;;  %v2226_v4 = vld [vmem:[%s3711_s1 + $0x350] sm:$0xff] }
  0xbc   : > { %681 = vmatpush.msrb.mxu1 %v2078_v5  ;;  %828 = vmatpush.msrb.mxu2 %v2093_v6  ;;  %v641_v3 = vld [vmem:[%s2924_s7 + $0x19] sm:$0xff]  ;;  %v2258_v6 = vld [vmem:[%s3711_s1 + $0x3d0] sm:$0xff] }
  0xbd   : > { %974 = vmatpush.msrb.mxu3 %v2126_v7  ;;  %1116 = vmatpush.msrb.mxu0 %v2162_v8  ;;  %v2292_v5 = vld [vmem:[%s3711_s1 + $0x460] sm:$0xff]  ;;  %v2106_v7 = vld [vmem:[%s2924_s7 + $0xd8] sm:$0xff]  ;;  %v2137_v8 = vld [vmem:[%s2924_s7 + $0xc9] sm:$0xff] }
  0xbe   : > { %682 = vmatpush.msrb.mxu1 %v2077_v9  ;;  %829 = vmatpush.msrb.mxu2 %v2092_v10  ;;  %v2291_v9 = vld [vmem:[%s3711_s1 + $0x458] sm:$0xff]  ;;  %v2194_v10 = vld [vmem:[%s3711_s1 + $0x2d0] sm:$0xff] }
  0xbf   : > { %975 = vmatpush.msrb.mxu3 %v2125_v11  ;;  %1117 = vmatpush.msrb.mxu0 %v2161_v12  ;;  %v2225_v11 = vld [vmem:[%s3711_s1 + $0x348] sm:$0xff] }
  0xc0   : > { %683 = vmatpush.msrb.mxu1 %v2076_v13  ;;  %607 = vmatmul.f32.gmra.mxu2 %v537_v14  ;;  %v2257_v12 = vld [vmem:[%s3711_s1 + $0x3c8] sm:$0xff]  ;;  %v2290_v13 = vld [vmem:[%s3711_s1 + $0x450] sm:$0xff] }
  0xc1   : > { %595 = vmatmul.f32.gmra.mxu1 %v533_v15  ;;  %830 = vmatpush.msrb.mxu2 %v2091_v16  ;;  %v2193_v14 = vld [vmem:[%s3711_s1 + $0x2c8] sm:$0xff] }
  0xc2   : > { %976 = vmatpush.msrb.mxu3 %v2124_v17  ;;  %1118 = vmatpush.msrb.mxu0 %v2160_v18  ;;  %v788_v15 = vld [vmem:[%s2924_s7 + $0x22] sm:$0xff]  ;;  %v2138_v18 = vld [vmem:[%s2924_s7 + $0xd9] sm:$0xff] }
  0xc3   : > { %684 = vmatpush.msrb.mxu1 %v2075_v19  ;;  %580 = vmatmul.f32.gmra.mxu0 %v528_v20  ;;  %v642_v16 = vld [vmem:[%s2924_s7 + $0x21] sm:$0xff] }
  0xc4   : > { %619 = vmatmul.f32.gmra.mxu3 %v541_v21  ;;  %831 = vmatpush.msrb.mxu2 %v2090_v22  ;;  %v2107_v17 = vld [vmem:[%s2924_s7 + $0xe0] sm:$0xff]  ;;  %v2289_v21 = vld [vmem:[%s3711_s1 + $0x448] sm:$0xff] }
  0xc5   : > { %977 = vmatpush.msrb.mxu3 %v2123_v23  ;;  %1119 = vmatpush.msrb.mxu0 %v2159_v24  ;;  %v2224_v19 = vld [vmem:[%s3711_s1 + $0x340] sm:$0xff]  ;;  %v789_v23 = vld [vmem:[%s2924_s7 + $0x32] sm:$0xff] }
  0xc6   : > { %685 = vmatpush.msrb.mxu1 %v2074_v25  ;;  %832 = vmatpush.msrb.mxu2 %v2089_v26  ;;  %v2256_v20 = vld [vmem:[%s3711_s1 + $0x3c0] sm:$0xff]  ;;  %v643_v24 = vld [vmem:[%s2924_s7 + $0x31] sm:$0xff] }
  0xc7   : > { %978 = vmatpush.msrb.mxu3 %v2122_v27  ;;  %1120 = vmatpush.msrb.mxu0 %v2158_v28  ;;  %v2192_v22 = vld [vmem:[%s3711_s1 + $0x2c0] sm:$0xff]  ;;  %v2108_v25 = vld [vmem:[%s2924_s7 + $0xf0] sm:$0xff]  ;;  %v2223_v27 = vld [vmem:[%s3711_s1 + $0x338] sm:$0xff] }
  0xc8   : > { %686 = vmatpush.msrb.mxu1 %v2073_v29  ;;  %833 = vmatpush.msrb.mxu2 %v2088_v30  ;;  %v2139_v26 = vld [vmem:[%s2924_s7 + $0xe1] sm:$0xff]  ;;  %v2255_v28 = vld [vmem:[%s3711_s1 + $0x3b8] sm:$0xff] }
  0xc9   : > { %979 = vmatpush.msrb.mxu3 %v2121_v31  ;;  %1121 = vmatpush.msrb.mxu0 %v2157_v32  ;;  %v2288_v29 = vld [vmem:[%s3711_s1 + $0x440] sm:$0xff]  ;;  %v2191_v30 = vld [vmem:[%s3711_s1 + $0x2b8] sm:$0xff] }
  0xca   : > { %687 = vmatpush.msrb.mxu1 %v2072_v33  ;;  %834 = vmatmul.f32.vlgmr.msrb.gmra.mxu2 %v785_v34  ;;  %v790_v31 = vld [vmem:[%s2924_s7 + $0x3a] sm:$0xff]  ;;  %v2140_v34 = vld [vmem:[%s2924_s7 + $0xf1] sm:$0xff] }
  0xcb   : > { %688 = vmatmul.f32.vlgmr.msrb.gmra.mxu1 %v639_v35  ;;  %980 = vmatpush.msrb.mxu3 %v2120_v36  ;;  %v644_v32 = vld [vmem:[%s2924_s7 + $0x39] sm:$0xff]  ;;  %v2222_v35 = vld [vmem:[%s3711_s1 + $0x330] sm:$0xff] }
  0xcc   : > { %1122 = vmatpush.msrb.mxu0 %v2156_v37  ;;  %1404 = vmatpush.msra.mxu2 %v2231_v38  ;;  %v2109_v33 = vld [vmem:[%s2924_s7 + $0xf8] sm:$0xff]  ;;  %v2254_v36 = vld [vmem:[%s3711_s1 + $0x3b0] sm:$0xff] }
  0xcd   : > { %583 = vmatmul.f32.gmra.mxu0 %v529_v39  ;;  %981 = vmatmul.f32.vlgmr.msrb.gmra.mxu3 %v2104_v40  ;;  %v2287_v37 = vld [vmem:[%s3711_s1 + $0x438] sm:$0xff]  ;;  %v2190_v38 = vld [vmem:[%s3711_s1 + $0x2b0] sm:$0xff] }
  0xce   : > { %1123 = vmatpush.msrb.mxu0 %v2155_v41  ;;  %1550 = vmatpush.msra.mxu3 %v2263_v42  ;;  %v791_v39 = vld [vmem:[%s2924_s7 + $0x4a] sm:$0xff]  ;;  %v2141_v42 = vld [vmem:[%s2924_s7 + $0xf9] sm:$0xff] }
  0xcf   : > { %1257 = vmatpush.msra.mxu1 %v2199_v43  ;;  %1405 = vmatpush.msra.mxu2 %v2230_v44  ;;  %v645_v40 = vld [vmem:[%s2924_s7 + $0x49] sm:$0xff] }
  0xd0   : > { %1124 = vmatpush.msrb.mxu0 %v2154_v45  ;;  %1551 = vmatpush.msra.mxu3 %v2262_v46  ;;  %v2110_v41 = vld [vmem:[%s2924_s7 + $0x108] sm:$0xff]  ;;  %v2286_v45 = vld [vmem:[%s3711_s1 + $0x430] sm:$0xff] }
  0xd1   : > { %1258 = vmatpush.msra.mxu1 %v2198_v47  ;;  %1406 = vmatpush.msra.mxu2 %v2229_v48  ;;  %v2221_v43 = vld [vmem:[%s3711_s1 + $0x328] sm:$0xff]  ;;  %v792_v47 = vld [vmem:[%s2924_s7 + $0x52] sm:$0xff] }
  0xd2   : > { %1125 = vmatpush.msrb.mxu0 %v2153_v49  ;;  %837 = vmatmul.f32.gmra.mxu2 %v786_v50  ;;  %v2253_v44 = vld [vmem:[%s3711_s1 + $0x3a8] sm:$0xff]  ;;  %v646_v48 = vld [vmem:[%s2924_s7 + $0x51] sm:$0xff] }
  0xd3   : > { %691 = vmatmul.f32.gmra.mxu1 %v640_v51  ;;  %1552 = vmatpush.msra.mxu3 %v2261_v52  ;;  %v2189_v46 = vld [vmem:[%s3711_s1 + $0x2a8] sm:$0xff]  ;;  %v2111_v49 = vld [vmem:[%s2924_s7 + $0x110] sm:$0xff]  ;;  %v2220_v51 = vld [vmem:[%s3711_s1 + $0x320] sm:$0xff] }
  0xd4   : > { %1126 = vmatpush.msrb.mxu0 %v2152_v53  ;;  %1259 = vmatpush.msra.mxu1 %v2197_v54  ;;  %v2142_v50 = vld [vmem:[%s2924_s7 + $0x109] sm:$0xff]  ;;  %v2252_v52 = vld [vmem:[%s3711_s1 + $0x3a0] sm:$0xff] }
  0xd5   : > { %984 = vmatmul.f32.gmra.mxu3 %v2105_v55  ;;  %1127 = vmatmul.f32.vlgmr.msrb.gmra.mxu0 %v2136_v56  ;;  %v2285_v53 = vld [vmem:[%s3711_s1 + $0x428] sm:$0xff]  ;;  %v2188_v54 = vld [vmem:[%s3711_s1 + $0x2a0] sm:$0xff] }
  0xd6   : > { %1696 = vmatpush.msra.mxu0 %v2295_v57  ;;  %1407 = vmatpush.msra.mxu2 %v2228_v58  ;;  %v793_v55 = vld [vmem:[%s2924_s7 + $0x62] sm:$0xff]  ;;  %v2143_v58 = vld [vmem:[%s2924_s7 + $0x111] sm:$0xff] }
  0xd7   : > { %1553 = vmatpush.msra.mxu3 %v2260_v59  ;;  %1260 = vmatpush.msra.mxu1 %v2196_v60  ;;  %v647_v56 = vld [vmem:[%s2924_s7 + $0x61] sm:$0xff]  ;;  %v2219_v59 = vld [vmem:[%s3711_s1 + $0x318] sm:$0xff] }
  0xd8   : > { %1697 = vmatpush.msra.mxu0 %v2294_v61  ;;  %1408 = vmatpush.msra.mxu2 %v2227_v62  ;;  %v2112_v57 = vld [vmem:[%s2924_s7 + $0x120] sm:$0xff]  ;;  %v2251_v60 = vld [vmem:[%s3711_s1 + $0x398] sm:$0xff] }
  0xd9   : > { %1554 = vmatpush.msra.mxu3 %v2259_v63  ;;  %1261 = vmatpush.msra.mxu1 %v2195_v0  ;;  %v2284_v61 = vld [vmem:[%s3711_s1 + $0x420] sm:$0xff]  ;;  %v2187_v62 = vld [vmem:[%s3711_s1 + $0x298] sm:$0xff]  ;;  %v794_v63 = vld [vmem:[%s2924_s7 + $0x6a] sm:$0xff] }
  0xda   : > { %840 = vmatmul.f32.gmra.mxu2 %v787_v1  ;;  %1698 = vmatpush.msra.mxu0 %v2293_v2  ;;  %v648_v0 = vld [vmem:[%s2924_s7 + $0x69] sm:$0xff]  ;;  %v2144_v2 = vld [vmem:[%s2924_s7 + $0x121] sm:$0xff] }
  0xdb   : > { %694 = vmatmul.f32.gmra.mxu1 %v641_v3  ;;  %1409 = vmatpush.msra.mxu2 %v2226_v4  ;;  %v2113_v1 = vld [vmem:[%s2924_s7 + $0x128] sm:$0xff]  ;;  %v2218_v3 = vld [vmem:[%s3711_s1 + $0x310] sm:$0xff] }
  0xdc   : > { %1699 = vmatpush.msra.mxu0 %v2292_v5  ;;  %1555 = vmatpush.msra.mxu3 %v2258_v6  ;;  %v2250_v4 = vld [vmem:[%s3711_s1 + $0x390] sm:$0xff]  ;;  %v2283_v5 = vld [vmem:[%s3711_s1 + $0x418] sm:$0xff] }
  0xdd   : > { %987 = vmatmul.f32.gmra.mxu3 %v2106_v7  ;;  %1130 = vmatmul.f32.gmra.mxu0 %v2137_v8  ;;  %v2186_v6 = vld [vmem:[%s3711_s1 + $0x290] sm:$0xff]  ;;  %v795_v7 = vld [vmem:[%s2924_s7 + $0x7a] sm:$0xff] }
  0xde   : > { %1700 = vmatpush.msra.mxu0 %v2291_v9  ;;  %1262 = vmatpush.msra.mxu1 %v2194_v10  ;;  %v649_v8 = vld [vmem:[%s2924_s7 + $0x79] sm:$0xff]  ;;  %v2145_v10 = vld [vmem:[%s2924_s7 + $0x129] sm:$0xff] }
  0xdf   : > { %1410 = vmatpush.msra.mxu2 %v2225_v11  ;;  %1556 = vmatpush.msra.mxu3 %v2257_v12  ;;  %v2114_v9 = vld [vmem:[%s2924_s7 + $0x138] sm:$0xff]  ;;  %v2217_v11 = vld [vmem:[%s3711_s1 + $0x308] sm:$0xff] }
  0xe0   : > { %1701 = vmatpush.msra.mxu0 %v2290_v13  ;;  %1263 = vmatpush.msra.mxu1 %v2193_v14  ;;  %v2249_v12 = vld [vmem:[%s3711_s1 + $0x388] sm:$0xff]  ;;  %v2282_v13 = vld [vmem:[%s3711_s1 + $0x410] sm:$0xff] }
  0xe1   : > { %1411 = vmatpush.msra.mxu2 %v2224_v19  ;;  %1557 = vmatpush.msra.mxu3 %v2256_v20  ;;  %v2185_v14 = vld [vmem:[%s3711_s1 + $0x288] sm:$0xff]  ;;  %v2216_v20 = vld [vmem:[%s3711_s1 + $0x300] sm:$0xff] }
  0xe2   : > { %843 = vmatmul.f32.gmra.mxu2 %v788_v15  ;;  %1702 = vmatpush.msra.mxu0 %v2289_v21  ;;  %v796_v15 = vld [vmem:[%s2924_s7 + $0x82] sm:$0xff] }
  0xe3   : > { %697 = vmatmul.f32.gmra.mxu1 %v642_v16  ;;  %1412 = vmatpush.msra.mxu2 %v2223_v27  ;;  %v650_v16 = vld [vmem:[%s2924_s7 + $0x81] sm:$0xff]  ;;  %v2116_v27 = vld [vmem:[%s2924_s7 + $0x150] sm:$0xff] }
  0xe4   : > { %1264 = vmatpush.msra.mxu1 %v2192_v22  ;;  %1558 = vmatpush.msra.mxu3 %v2255_v28  ;;  %v2248_v21 = vld [vmem:[%s3711_s1 + $0x380] sm:$0xff]  ;;  %v2281_v22 = vld [vmem:[%s3711_s1 + $0x408] sm:$0xff] }
  0xe5   : > { %990 = vmatmul.f32.gmra.mxu3 %v2107_v17  ;;  %1133 = vmatmul.f32.gmra.mxu0 %v2138_v18  ;;  %v2115_v17 = vld [vmem:[%s2924_s7 + $0x140] sm:$0xff] }
  0xe6   : > { %1703 = vmatpush.msra.mxu0 %v2288_v29  ;;  %1265 = vmatpush.msra.mxu1 %v2191_v30  ;;  %v2146_v18 = vld [vmem:[%s2924_s7 + $0x139] sm:$0xff]  ;;  %v2147_v28 = vld [vmem:[%s2924_s7 + $0x141] sm:$0xff] }
  0xe7   : > { %1413 = vmatpush.msra.mxu2 %v2222_v35  ;;  %1559 = vmatpush.msra.mxu3 %v2254_v36  ;;  %v2117_v36 = vld [vmem:[%s2924_s7 + $0x158] sm:$0xff] }
  0xe8   : > { %1704 = vmatpush.msra.mxu0 %v2287_v37  ;;  %1266 = vmatpush.msra.mxu1 %v2190_v38  ;;  %v2148_v37 = vld [vmem:[%s2924_s7 + $0x151] sm:$0xff] }
  0xe9   : > { %1414 = vmatpush.msra.mxu2 %v2221_v43  ;;  %1560 = vmatpush.msra.mxu3 %v2253_v44  ;;  %v2118_v44 = vld [vmem:[%s2924_s7 + $0x168] sm:$0xff] }
  0xea   : > { %846 = vmatmul.f32.gmra.mxu2 %v789_v23  ;;  %1705 = vmatpush.msra.mxu0 %v2286_v45  ;;  %v2184_v23 = vld [vmem:[%s3711_s1 + $0x280] sm:$0xff] }
  0xeb   : > { %700 = vmatmul.f32.gmra.mxu1 %v643_v24  ;;  %1415 = vmatpush.msra.mxu2 %v2220_v51  ;;  %v797_v24 = vld [vmem:[%s2924_s7 + $0x92] sm:$0xff] }
  0xec   : > { %1267 = vmatpush.msra.mxu1 %v2189_v46  ;;  %1561 = vmatpush.msra.mxu3 %v2252_v52  ;;  %v2149_v45 = vld [vmem:[%s2924_s7 + $0x159] sm:$0xff]  ;;  %v2119_v51 = vld [vmem:[%s2924_s7 + $0x170] sm:$0xff] }
  0xed   : > { %993 = vmatmul.f32.gmra.mxu3 %v2108_v25  ;;  %1136 = vmatmul.f32.gmra.mxu0 %v2139_v26  ;;  %v651_v25 = vld [vmem:[%s2924_s7 + $0x91] sm:$0xff]  ;;  %v2150_v52 = vld [vmem:[%s2924_s7 + $0x169] sm:$0xff] }
  0xee   : > { %1706 = vmatpush.msra.mxu0 %v2285_v53  ;;  %1268 = vmatpush.msra.mxu1 %v2188_v54 }
  0xef   : > { %1416 = vmatpush.msra.mxu2 %v2219_v59  ;;  %1562 = vmatpush.msra.mxu3 %v2251_v60  ;;  %v2151_v59 = vld [vmem:[%s2924_s7 + $0x171] sm:$0xff]  ;;  %v2232_v60 = vld [vmem:[%s2924_s7 + $0x181] sm:$0xff] }
  0xf0   : > { %1707 = vmatpush.msra.mxu0 %v2284_v61  ;;  %1269 = vmatpush.msra.mxu1 %v2187_v62 }
  0xf1   : > { %1417 = vmatpush.msra.mxu2 %v2218_v3  ;;  %1563 = vmatpush.msra.mxu3 %v2250_v4  ;;  %v2169_v3 = vld [vmem:[%s2924_s7 + $0xca] sm:$0xff] }
  0xf2   : > { %849 = vmatmul.f32.gmra.mxu2 %v790_v31  ;;  %1708 = vmatpush.msra.mxu0 %v2283_v5 }
  0xf3   : > { %703 = vmatmul.f32.gmra.mxu1 %v644_v32  ;;  %1418 = vmatpush.msra.mxu2 %v2217_v11  ;;  %v2280_v32 = vld [vmem:[%s3711_s1 + $0x400] sm:$0xff]  ;;  %v2202_v11 = vld [vmem:[%s2924_s7 + $0x198] sm:$0xff] }
  0xf4   : > { %1270 = vmatpush.msra.mxu1 %v2186_v6  ;;  %1564 = vmatpush.msra.mxu3 %v2249_v12  ;;  %v2233_v6 = vld [vmem:[%s2924_s7 + $0x189] sm:$0xff] }
  0xf5   : > { %996 = vmatmul.f32.gmra.mxu3 %v2109_v33  ;;  %1139 = vmatmul.f32.gmra.mxu0 %v2140_v34  ;;  %v798_v33 = vld [vmem:[%s2924_s7 + $0x9a] sm:$0xff] }
  0xf6   : > { %1709 = vmatpush.msra.mxu0 %v2282_v13  ;;  %1271 = vmatpush.msra.mxu1 %v2185_v14  ;;  %v652_v34 = vld [vmem:[%s2924_s7 + $0x99] sm:$0xff] }
  0xf7   : > { %1419 = vmatpush.msra.mxu2 %v2216_v20  ;;  %1565 = vmatpush.msra.mxu3 %v2248_v21  ;;  %v2170_v14 = vld [vmem:[%s2924_s7 + $0xda] sm:$0xff] }
  0xf8   : > { %1710 = vmatpush.msra.mxu0 %v2281_v22  ;;  %1272 = vmatpush.msra.mxu1 %v2184_v23  ;;  %v2203_v23 = vld [vmem:[%s2924_s7 + $0x1a0] sm:$0xff] }
  0xfa   : > { %852 = vmatmul.f32.gmra.mxu2 %v791_v39  ;;  %1711 = vmatpush.msra.mxu0 %v2280_v32  ;;  %v2235_v32 = vld [vmem:[%s2924_s7 + $0x1a1] sm:$0xff] }
  0xfb   : > { %706 = vmatmul.f32.gmra.mxu1 %v645_v40 }
  0xfd   : > { %999 = vmatmul.f32.gmra.mxu3 %v2110_v41  ;;  %1142 = vmatmul.f32.gmra.mxu0 %v2141_v42  ;;  %v799_v41 = vld [vmem:[%s2924_s7 + $0xaa] sm:$0xff] }
  0xfe   : > { %v653_v42 = vld [vmem:[%s2924_s7 + $0xa9] sm:$0xff] }
 0x102   : > { %855 = vmatmul.f32.gmra.mxu2 %v792_v47 }
 0x103   : > { %709 = vmatmul.f32.gmra.mxu1 %v646_v48  ;;  %v800_v48 = vld [vmem:[%s2924_s7 + $0xb2] sm:$0xff] }
 0x105   : > { %1002 = vmatmul.f32.gmra.mxu3 %v2111_v49  ;;  %1145 = vmatmul.f32.gmra.mxu0 %v2142_v50  ;;  %v654_v50 = vld [vmem:[%s2924_s7 + $0xb1] sm:$0xff] }
 0x10a   : > { %858 = vmatmul.f32.gmra.mxu2 %v793_v55  ;;  %v2200_v55 = vld [vmem:[%s2924_s7 + $0x180] sm:$0xff] }
 0x10b   : > { %712 = vmatmul.f32.gmra.mxu1 %v647_v56 }
 0x10d   : > { %1005 = vmatmul.f32.gmra.mxu3 %v2112_v57  ;;  %1148 = vmatmul.f32.gmra.mxu0 %v2143_v58  ;;  %v2168_v57 = vld [vmem:[%s2924_s7 + $0xc2] sm:$0xff] }
 0x112   : > { %861 = vmatmul.f32.gmra.mxu2 %v794_v63 }
 0x113   : > { %715 = vmatmul.f32.gmra.mxu1 %v648_v0  ;;  %v2201_v0 = vld [vmem:[%s2924_s7 + $0x188] sm:$0xff] }
 0x115   : > { %1008 = vmatmul.f32.gmra.mxu3 %v2113_v1  ;;  %1151 = vmatmul.f32.gmra.mxu0 %v2144_v2 }
 0x11a   : > { %864 = vmatmul.f32.gmra.mxu2 %v795_v7  ;;  %v2264_v7 = vld [vmem:[%s2924_s7 + $0x182] sm:$0xff] }
 0x11b   : > { %718 = vmatmul.f32.gmra.mxu1 %v649_v8 }
 0x11d   : > { %1011 = vmatmul.f32.gmra.mxu3 %v2114_v9  ;;  %1154 = vmatmul.f32.gmra.mxu0 %v2145_v10 }
 0x122   : > { %867 = vmatmul.f32.gmra.mxu2 %v796_v15  ;;  %v3412_v19 = vpop.f32.mrf.mxu1 }
 0x123   : > { %721 = vmatmul.f32.gmra.mxu1 %v650_v16 }
 0x125   : > { %1014 = vmatmul.f32.gmra.mxu3 %v2115_v17  ;;  %1157 = vmatmul.f32.gmra.mxu0 %v2146_v18  ;;  %v2234_v17 = vld [vmem:[%s2924_s7 + $0x199] sm:$0xff]  ;;  %v2265_v18 = vld [vmem:[%s2924_s7 + $0x18a] sm:$0xff] }
 0x128   : > { %v3428_v26 = vpop.f32.mrf.mxu2  ;;  %v575_v31 = vpop.f32.mrf.mxu0 }
 0x12a   : > { %870 = vmatmul.f32.gmra.mxu2 %v797_v24  ;;  %v3432_v29 = vpop.f32.mrf.mxu3 }
 0x12b   : > { %724 = vmatmul.f32.gmra.mxu1 %v651_v25  ;;  %v3434_v30 = vpop.f32.mrf.mxu1 }
 0x12d   : > { %1017 = vmatmul.f32.gmra.mxu3 %v2116_v27  ;;  %1160 = vmatmul.f32.gmra.mxu0 %v2147_v28  ;;  %v2171_v27 = vld [vmem:[%s2924_s7 + $0xe2] sm:$0xff] }
 0x130   : > { %v3441_v35 = vpop.f32.mrf.mxu2 }
 0x132   : > { %873 = vmatmul.f32.gmra.mxu2 %v798_v33  ;;  %v2266_v33 = vld [vmem:[%s2924_s7 + $0x19a] sm:$0xff] }
 0x133   : > { %727 = vmatmul.f32.gmra.mxu1 %v652_v34  ;;  %v3445_v38 = vpop.f32.mrf.mxu3 }
 0x134   : > { %v3447_v39 = vpop.f32.mrf.mxu1 }
 0x135   : > { %1020 = vmatmul.f32.gmra.mxu3 %v2117_v36  ;;  %1163 = vmatmul.f32.gmra.mxu0 %v2148_v37 }
 0x136   : > { %v578_v40 = vpop.f32.mrf.mxu0 }
 0x139   : > { %v3451_v43 = vpop.f32.mrf.mxu2 }
 0x13a   : > { %876 = vmatmul.f32.gmra.mxu2 %v799_v41 }
 0x13b   : > { %730 = vmatmul.f32.gmra.mxu1 %v653_v42 }
 0x13d   : > { %1023 = vmatmul.f32.gmra.mxu3 %v2118_v44  ;;  %1166 = vmatmul.f32.gmra.mxu0 %v2149_v45  ;;  %v3455_v46 = vpop.f32.mrf.mxu3  ;;  %v2172_v44 = vld [vmem:[%s2924_s7 + $0xf2] sm:$0xff] }
 0x13e   : > { %v3457_v47 = vpop.f32.mrf.mxu1 }
 0x140   : > { %v581_v49 = vpop.f32.mrf.mxu0 }
 0x142   : > { %879 = vmatmul.f32.gmra.mxu2 %v800_v48 }
 0x143   : > { %733 = vmatmul.f32.gmra.mxu1 %v654_v50  ;;  %v3463_v53 = vpop.f32.mrf.mxu2  ;;  %v2267_v50 = vld [vmem:[%s2924_s7 + $0x1a2] sm:$0xff] }
 0x145   : > { %1026 = vmatmul.f32.gmra.mxu3 %v2119_v51  ;;  %1169 = vmatmul.f32.gmra.mxu0 %v2150_v52 }
 0x147   : > { %v3465_v54 = vpop.f32.mrf.mxu3 }
 0x148   : > { %v689_v56 = vpop.f32.mrf.mxu1 }
 0x149   : > { %v753_v61 = vadd.f32 %v689_v56, %v575_v31  ;;  %v2205_v56 = vld [vmem:[%s2924_s7 + $0x1b8] sm:$0xff] }
 0x14a   : > { %v584_v58 = vpop.f32.mrf.mxu0  ;;  %1420 = vmatmul.f32.vlgmr.msra.gmra.mxu2 %v2200_v55 }
 0x14b   : > { %1273 = vmatmul.f32.vlgmr.msra.gmra.mxu1 %v2168_v57 }
 0x14d   : > { %1172 = vmatmul.f32.gmra.mxu0 %v2151_v59  ;;  %1566 = vmatmul.f32.vlgmr.msra.gmra.mxu3 %v2232_v60  ;;  %v835_v62 = vpop.f32.mrf.mxu2  ;;  %v2173_v59 = vld [vmem:[%s2924_s7 + $0xfa] sm:$0xff] }
 0x14e   : > { %v899_v63 = vadd.f32 %v835_v62, %v753_v61  ;;  %v2237_v62 = vld [vmem:[%s2924_s7 + $0x1b9] sm:$0xff] }
 0x150   : > { %v692_v1 = vpop.f32.mrf.mxu1  ;;  %v982_v2 = vpop.f32.mrf.mxu3 }
 0x151   : > { %v3473_v4 = vadd.f32 %v982_v2, %v899_v63  ;;  %v754_v8 = vadd.f32 %v692_v1, %v578_v40  ;;  %v2204_v40 = vld [vmem:[%s2924_s7 + $0x1b0] sm:$0xff]  ;;  %v2206_v2 = vld [vmem:[%s2924_s7 + $0x1c8] sm:$0xff] }
 0x152   : > { %v3475_v5 = vpop.f32.mrf.mxu0  ;;  %1423 = vmatmul.f32.gmra.mxu2 %v2201_v0  ;;  %v2268_v63 = vld [vmem:[%s2924_s7 + $0x1b2] sm:$0xff] }
 0x153   : > { %1276 = vmatmul.f32.gmra.mxu1 %v2169_v3 }
 0x155   : > { %1569 = vmatmul.f32.gmra.mxu3 %v2233_v6  ;;  %1712 = vmatmul.f32.vlgmr.msra.gmra.mxu0 %v2264_v7  ;;  %v838_v9 = vpop.f32.mrf.mxu2  ;;  %v2174_v7 = vld [vmem:[%s2924_s7 + $0x10a] sm:$0xff] }
 0x156   : > { %v900_v10 = vadd.f32 %v838_v9, %v754_v8 }
 0x158   : > { %v695_v12 = vpop.f32.mrf.mxu1  ;;  %v985_v13 = vpop.f32.mrf.mxu3 }
 0x159   : > { %v3481_v15 = vadd.f32 %v985_v13, %v900_v10  ;;  %v755_v20 = vadd.f32 %v695_v12, %v581_v49  ;;  %v2236_v49 = vld [vmem:[%s2924_s7 + $0x1b1] sm:$0xff]  ;;  %v2238_v10 = vld [vmem:[%s2924_s7 + $0x1c9] sm:$0xff] }
 0x15a   : > { %v3483_v16 = vpop.f32.mrf.mxu0  ;;  %1426 = vmatmul.f32.gmra.mxu2 %v2202_v11  ;;  %v2269_v11 = vld [vmem:[%s2924_s7 + $0x1ba] sm:$0xff] }
 0x15b   : > { %1279 = vmatmul.f32.gmra.mxu1 %v2170_v14  ;;  %v2207_v14 = vld [vmem:[%s2924_s7 + $0x1d0] sm:$0xff] }
 0x15d   : > { %1572 = vmatmul.f32.gmra.mxu3 %v2234_v17  ;;  %1715 = vmatmul.f32.gmra.mxu0 %v2265_v18  ;;  %v841_v21 = vpop.f32.mrf.mxu2 }
 0x15e   : > { %v901_v22 = vadd.f32 %v841_v21, %v755_v20  ;;  %v2175_v20 = vld [vmem:[%s2924_s7 + $0x112] sm:$0xff] }
 0x160   : > { %v698_v24 = vpop.f32.mrf.mxu1  ;;  %v988_v25 = vpop.f32.mrf.mxu3 }
 0x161   : > { %v3489_v28 = vadd.f32 %v988_v25, %v901_v22  ;;  %v756_v34 = vadd.f32 %v698_v24, %v584_v58  ;;  %v2270_v24 = vld [vmem:[%s2924_s7 + $0x1ca] sm:$0xff] }
 0x162   : > { %v3491_v31 = vpop.f32.mrf.mxu0  ;;  %1429 = vmatmul.f32.gmra.mxu2 %v2203_v23  ;;  %v2239_v23 = vld [vmem:[%s2924_s7 + $0x1d1] sm:$0xff] }
 0x163   : > { %1282 = vmatmul.f32.gmra.mxu1 %v2171_v27 }
 0x165   : > { %1575 = vmatmul.f32.gmra.mxu3 %v2235_v32  ;;  %1718 = vmatmul.f32.gmra.mxu0 %v2266_v33  ;;  %v844_v36 = vpop.f32.mrf.mxu2  ;;  %v2208_v32 = vld [vmem:[%s2924_s7 + $0x1e0] sm:$0xff] }
 0x166   : > { %v902_v37 = vadd.f32 %v844_v36, %v756_v34  ;;  %v2176_v36 = vld [vmem:[%s2924_s7 + $0x122] sm:$0xff] }
 0x168   : > { %v701_v41 = vpop.f32.mrf.mxu1  ;;  %v991_v42 = vpop.f32.mrf.mxu3 }
 0x169   : > { %v3497_v45 = vadd.f32 %v991_v42, %v902_v37  ;;  %v757_v51 = vadd.f32 %v701_v41, %v3412_v19  ;;  %v2240_v41 = vld [vmem:[%s2924_s7 + $0x1e1] sm:$0xff]  ;;  %v2271_v42 = vld [vmem:[%s2924_s7 + $0x1d2] sm:$0xff] }
 0x16a   : > { %v3499_v48 = vpop.f32.mrf.mxu0  ;;  %1432 = vmatmul.f32.gmra.mxu2 %v2204_v40 }
 0x16b   : > { %1285 = vmatmul.f32.gmra.mxu1 %v2172_v44 }
 0x16d   : > { %1578 = vmatmul.f32.gmra.mxu3 %v2236_v49  ;;  %1721 = vmatmul.f32.gmra.mxu0 %v2267_v50  ;;  %v847_v52 = vpop.f32.mrf.mxu2  ;;  %v2209_v50 = vld [vmem:[%s2924_s7 + $0x1e8] sm:$0xff] }
 0x16e   : > { %v903_v55 = vadd.f32 %v847_v52, %v757_v51 }
 0x170   : > { %v704_v57 = vpop.f32.mrf.mxu1  ;;  %v994_v58 = vpop.f32.mrf.mxu3 }
 0x171   : > { %v3506_v60 = vadd.f32 %v994_v58, %v903_v55  ;;  %v758_v19 = vadd.f32 %v704_v57, %v3434_v30  ;;  %v2177_v55 = vld [vmem:[%s2924_s7 + $0x12a] sm:$0xff] }
 0x172   : > { %v3508_v61 = vpop.f32.mrf.mxu0  ;;  %1435 = vmatmul.f32.gmra.mxu2 %v2205_v56  ;;  %v2241_v58 = vld [vmem:[%s2924_s7 + $0x1e9] sm:$0xff] }
 0x173   : > { %1288 = vmatmul.f32.gmra.mxu1 %v2173_v59  ;;  %v2272_v59 = vld [vmem:[%s2924_s7 + $0x1e2] sm:$0xff] }
 0x175   : > { %1581 = vmatmul.f32.gmra.mxu3 %v2237_v62  ;;  %1724 = vmatmul.f32.gmra.mxu0 %v2268_v63  ;;  %v850_v0 = vpop.f32.mrf.mxu2 }
 0x176   : > { %v904_v1 = vadd.f32 %v850_v0, %v758_v19  ;;  %v2210_v0 = vld [vmem:[%s2924_s7 + $0x1f8] sm:$0xff] }
 0x178   : > { %v707_v3 = vpop.f32.mrf.mxu1  ;;  %v997_v6 = vpop.f32.mrf.mxu3 }
 0x179   : > { %v3515_v8 = vadd.f32 %v997_v6, %v904_v1  ;;  %v759_v30 = vadd.f32 %v707_v3, %v3447_v39  ;;  %v2178_v3 = vld [vmem:[%s2924_s7 + $0x13a] sm:$0xff] }
 0x17a   : > { %v3517_v9 = vpop.f32.mrf.mxu0  ;;  %1438 = vmatmul.f32.gmra.mxu2 %v2206_v2 }
 0x17b   : > { %1291 = vmatmul.f32.gmra.mxu1 %v2174_v7 }
 0x17d   : > { %1584 = vmatmul.f32.gmra.mxu3 %v2238_v10  ;;  %1727 = vmatmul.f32.gmra.mxu0 %v2269_v11  ;;  %v853_v12 = vpop.f32.mrf.mxu2  ;;  %v2242_v10 = vld [vmem:[%s2924_s7 + $0x1f9] sm:$0xff]  ;;  %v2273_v11 = vld [vmem:[%s2924_s7 + $0x1ea] sm:$0xff] }
 0x17e   : > { %v905_v13 = vadd.f32 %v853_v12, %v759_v30 }
 0x180   : > { %v710_v17 = vpop.f32.mrf.mxu1  ;;  %v1000_v18 = vpop.f32.mrf.mxu3 }
 0x181   : > { %v3524_v21 = vadd.f32 %v1000_v18, %v905_v13  ;;  %v760_v39 = vadd.f32 %v710_v17, %v3457_v47 }
 0x182   : > { %v3526_v22 = vpop.f32.mrf.mxu0  ;;  %1441 = vmatmul.f32.gmra.mxu2 %v2207_v14  ;;  %v2211_v14 = vld [vmem:[%s2924_s7 + $0x200] sm:$0xff] }
 0x183   : > { %1294 = vmatmul.f32.gmra.mxu1 %v2175_v20  ;;  %v2179_v20 = vld [vmem:[%s2924_s7 + $0x142] sm:$0xff] }
 0x185   : > { %1587 = vmatmul.f32.gmra.mxu3 %v2239_v23  ;;  %1730 = vmatmul.f32.gmra.mxu0 %v2270_v24  ;;  %v856_v25 = vpop.f32.mrf.mxu2 }
 0x186   : > { %v906_v27 = vadd.f32 %v856_v25, %v760_v39  ;;  %v2243_v39 = vld [vmem:[%s2924_s7 + $0x201] sm:$0xff] }
 0x187   : > { %v2274_v25 = vld [vmem:[%s2924_s7 + $0x1fa] sm:$0xff] }
 0x188   : > { %v713_v33 = vpop.f32.mrf.mxu1  ;;  %v1003_v34 = vpop.f32.mrf.mxu3 }
 0x189   : > { %v3533_v37 = vadd.f32 %v1003_v34, %v906_v27  ;;  %v761_v47 = vadd.f32 %v713_v33, %v3428_v26  ;;  %v2212_v34 = vld [vmem:[%s2924_s7 + $0x210] sm:$0xff] }
 0x18a   : > { %v3535_v40 = vpop.f32.mrf.mxu0  ;;  %1444 = vmatmul.f32.gmra.mxu2 %v2208_v32 }
 0x18b   : > { %1297 = vmatmul.f32.gmra.mxu1 %v2176_v36 }
 0x18d   : > { %1590 = vmatmul.f32.gmra.mxu3 %v2240_v41  ;;  %1733 = vmatmul.f32.gmra.mxu0 %v2271_v42  ;;  %v859_v44 = vpop.f32.mrf.mxu2  ;;  %v2180_v42 = vld [vmem:[%s2924_s7 + $0x152] sm:$0xff] }
 0x18e   : > { %v907_v49 = vadd.f32 %v859_v44, %v761_v47 }
 0x190   : > { %v716_v51 = vpop.f32.mrf.mxu1  ;;  %v1006_v52 = vpop.f32.mrf.mxu3 }
 0x191   : > { %v1054_v56 = vadd.f32 %v1006_v52, %v907_v49  ;;  %v762_v26 = vadd.f32 %v716_v51, %v3441_v35  ;;  %v2244_v49 = vld [vmem:[%s2924_s7 + $0x211] sm:$0xff] }
 0x192   : > { %v1152_v57 = vpop.f32.mrf.mxu0  ;;  %1447 = vmatmul.f32.gmra.mxu2 %v2209_v50  ;;  %v2275_v50 = vld [vmem:[%s2924_s7 + $0x202] sm:$0xff] }
 0x193   : > { %v3544_v62 = vadd.f32 %v1152_v57, %v1054_v56  ;;  %1300 = vmatmul.f32.gmra.mxu1 %v2177_v55  ;;  %v2213_v56 = vld [vmem:[%s2924_s7 + $0x218] sm:$0xff] }
 0x195   : > { %1593 = vmatmul.f32.gmra.mxu3 %v2241_v58  ;;  %1736 = vmatmul.f32.gmra.mxu0 %v2272_v59  ;;  %v862_v63 = vpop.f32.mrf.mxu2  ;;  %v2181_v59 = vld [vmem:[%s2924_s7 + $0x15a] sm:$0xff] }
 0x196   : > { %v908_v19 = vadd.f32 %v862_v63, %v762_v26 }
 0x198   : > { %v719_v1 = vpop.f32.mrf.mxu1  ;;  %v1009_v2 = vpop.f32.mrf.mxu3 }
 0x199   : > { %v1055_v6 = vadd.f32 %v1009_v2, %v908_v19  ;;  %v763_v35 = vadd.f32 %v719_v1, %v3451_v43  ;;  %v2245_v19 = vld [vmem:[%s2924_s7 + $0x219] sm:$0xff] }
 0x19a   : > { %v1155_v7 = vpop.f32.mrf.mxu0  ;;  %1450 = vmatmul.f32.gmra.mxu2 %v2210_v0  ;;  %v2276_v0 = vld [vmem:[%s2924_s7 + $0x212] sm:$0xff] }
 0x19b   : > { %v3551_v30 = vadd.f32 %v1155_v7, %v1055_v6  ;;  %1303 = vmatmul.f32.gmra.mxu1 %v2178_v3  ;;  %v2214_v6 = vld [vmem:[%s2924_s7 + $0x228] sm:$0xff] }
 0x19d   : > { %1596 = vmatmul.f32.gmra.mxu3 %v2242_v10  ;;  %1739 = vmatmul.f32.gmra.mxu0 %v2273_v11  ;;  %v865_v12 = vpop.f32.mrf.mxu2  ;;  %v2182_v11 = vld [vmem:[%s2924_s7 + $0x16a] sm:$0xff] }
 0x19e   : > { %v909_v13 = vadd.f32 %v865_v12, %v763_v35 }
 0x1a0   : > { %v722_v17 = vpop.f32.mrf.mxu1  ;;  %v1012_v18 = vpop.f32.mrf.mxu3 }
 0x1a1   : > { %v1056_v23 = vadd.f32 %v1012_v18, %v909_v13  ;;  %v764_v43 = vadd.f32 %v722_v17, %v3463_v53  ;;  %v2246_v13 = vld [vmem:[%s2924_s7 + $0x229] sm:$0xff] }
 0x1a2   : > { %v1158_v24 = vpop.f32.mrf.mxu0  ;;  %1453 = vmatmul.f32.gmra.mxu2 %v2211_v14  ;;  %v2277_v14 = vld [vmem:[%s2924_s7 + $0x21a] sm:$0xff] }
 0x1a3   : > { %v3558_v27 = vadd.f32 %v1158_v24, %v1056_v23  ;;  %1306 = vmatmul.f32.gmra.mxu1 %v2179_v20  ;;  %v2215_v23 = vld [vmem:[%s2924_s7 + $0x230] sm:$0xff] }
 0x1a5   : > { %1599 = vmatmul.f32.gmra.mxu3 %v2243_v39  ;;  %1742 = vmatmul.f32.gmra.mxu0 %v2274_v25  ;;  %v868_v32 = vpop.f32.mrf.mxu2  ;;  %v2183_v25 = vld [vmem:[%s2924_s7 + $0x172] sm:$0xff] }
 0x1a6   : > { %v910_v33 = vadd.f32 %v868_v32, %v764_v43 }
 0x1a8   : > { %v725_v36 = vpop.f32.mrf.mxu1  ;;  %v1015_v41 = vpop.f32.mrf.mxu3 }
 0x1a9   : > { %v1057_v47 = vadd.f32 %v1015_v41, %v910_v33  ;;  %v765_v53 = vadd.f32 %v725_v36, %v3432_v29  ;;  %v2247_v33 = vld [vmem:[%s2924_s7 + $0x231] sm:$0xff] }
 0x1aa   : > { %v1161_v44 = vpop.f32.mrf.mxu0  ;;  %1456 = vmatmul.f32.gmra.mxu2 %v2212_v34  ;;  %v2278_v34 = vld [vmem:[%s2924_s7 + $0x22a] sm:$0xff] }
 0x1ab   : > { %v3565_v51 = vadd.f32 %v1161_v44, %v1057_v47  ;;  %1309 = vmatmul.f32.gmra.mxu1 %v2180_v42 }
 0x1ad   : > { %1602 = vmatmul.f32.gmra.mxu3 %v2244_v49  ;;  %1745 = vmatmul.f32.gmra.mxu0 %v2275_v50  ;;  %v871_v52 = vpop.f32.mrf.mxu2  ;;  %v1192_v50 = vadd.f32 %v3475_v5, %v3473_v4 }
 0x1ae   : > { %v911_v55 = vadd.f32 %v871_v52, %v765_v53  ;;  %v2279_v52 = vld [vmem:[%s2924_s7 + $0x232] sm:$0xff]  ;;  %s2305_s7 = sshll.u32 %s2595_s18, 4 }
 0x1af   : > { %s1923_s21 = sadd.s32 %s2305_s7, %s2300_s0 }
 0x1b0   : > { %v728_v57 = vpop.f32.mrf.mxu1  ;;  %v1018_v58 = vpop.f32.mrf.mxu3  ;;  %s2301_s4 = sshll.u32 %s1923_s21, 3  ;;  %s2481_s21 = scalar_lea.hbm %s3712_s2, 512 }
 0x1b1   : > { %v1058_v26 = vadd.f32 %v1018_v58, %v911_v55  ;;  %v766_v29 = vadd.f32 %v728_v57, %v3445_v38  ;;  %s1925_s27 = scalar_lea.hbm %s3712_s2, %s2301_s4 }
 0x1b2   : > { %v1164_v63 = vpop.f32.mrf.mxu0  ;;  %1459 = vmatmul.f32.gmra.mxu2 %v2213_v56  ;;  %s1928_s28 = sshll.u32 %s1925_s27, 4  ;;  %s1929_s28 = int_to_ptr.hbm [resolvable:$true] %s1928_s28 }
 0x1b3   : > { %v3572_v1 = vadd.f32 %v1164_v63, %v1058_v26  ;;  %1312 = vmatmul.f32.gmra.mxu1 %v2181_v59  ;;  %v1193_v63 = vadd.f32 %v3483_v16, %v3481_v15  ;;  %s2475_s11 = sshra.s32 %s1929_s28, 4  ;;  %s2476_s11 = int_to_ptr.hbm [resolvable:$true] %s2475_s11 }
 0x1b4   : > { %s2477_s30 = scalar_lea.hbm %s2476_s11, 128  ;;  %p2482_p12 = scmp.lt.s32.totalorder %s2476_s11, %s3712_s2 }
 0x1b5   : > { %1605 = vmatmul.f32.gmra.mxu3 %v2245_v19  ;;  %1748 = vmatmul.f32.gmra.mxu0 %v2276_v0  ;;  %v874_v2 = vpop.f32.mrf.mxu2  ;;  %p2478_p7 = scmp.ne.s32.totalorder %s2476_s11, %s2477_s30  ;;  %p2483_p0 = scmp.lt.s32.totalorder %s2481_s21, %s2477_s30 }
 0x1b6   : > { %v912_v3 = vadd.f32 %v874_v2, %v766_v29 }
 0x1b7   : > { %p2479_p10 = pnand %p2478_p7, %p2722_p8  ;;  %p2484_p2 = por %p2483_p0, %p2482_p12 }
 0x1b8   : > { %v731_v7 = vpop.f32.mrf.mxu1  ;;  %v1021_v10 = vpop.f32.mrf.mxu3 }
 0x1b9   : > { %v1059_v35 = vadd.f32 %v1021_v10, %v912_v3  ;;  %v767_v38 = vadd.f32 %v731_v7, %v3455_v46  ;;  %v1194_v7 = vadd.f32 %v3491_v31, %v3489_v28  ;;  %p2480_p11 = pneg %p2479_p10 }
 0x1ba   : > { %v1167_v12 = vpop.f32.mrf.mxu0  ;;  %1462 = vmatmul.f32.gmra.mxu2 %v2214_v6 }
 0x1bb   : > { %v3579_v17 = vadd.f32 %v1167_v12, %v1059_v35  ;;  %1315 = vmatmul.f32.gmra.mxu1 %v2182_v11  ;;  %p2485_p3 = pnand %p2484_p2, %p2480_p11 }
 0x1bd   : > { %1608 = vmatmul.f32.gmra.mxu3 %v2246_v13  ;;  %1751 = vmatmul.f32.gmra.mxu0 %v2277_v14  ;;  %v877_v18 = vpop.f32.mrf.mxu2 }
 0x1be   : > { %v913_v20 = vadd.f32 %v877_v18, %v767_v38 }
 0x1c0   : > { %v734_v24 = vpop.f32.mrf.mxu1  ;;  %v1024_v39 = vpop.f32.mrf.mxu3 }
 0x1c1   : > { %v1060_v43 = vadd.f32 %v1024_v39, %v913_v20  ;;  %v768_v41 = vadd.f32 %v734_v24, %v3465_v54  ;;  %v1195_v24 = vadd.f32 %v3499_v48, %v3497_v45 }
 0x1c2   : > { %v1170_v32 = vpop.f32.mrf.mxu0  ;;  %1465 = vmatmul.f32.gmra.mxu2 %v2215_v23 }
 0x1c3   : > { %v3586_v36 = vadd.f32 %v1170_v32, %v1060_v43  ;;  %1318 = vmatmul.f32.gmra.mxu1 %v2183_v25 }
 0x1c5   : > { %1611 = vmatmul.f32.gmra.mxu3 %v2247_v33  ;;  %1754 = vmatmul.f32.gmra.mxu0 %v2278_v34  ;;  %v880_v46 = vpop.f32.mrf.mxu2 }
 0x1c6   : > { %v914_v42 = vadd.f32 %v880_v46, %v768_v41 }
 0x1c8   : > { %v1027_v47 = vpop.f32.mrf.mxu3  ;;  %v1274_v44 = vpop.f32.mrf.mxu1 }
 0x1c9   : > { %v1061_v49 = vadd.f32 %v1027_v47, %v914_v42  ;;  %v1338_v56 = vadd.f32 %v1274_v44, %v1192_v50  ;;  %v1196_v47 = vadd.f32 %v3508_v61, %v3506_v60 }
 0x1ca   : > { %v1173_v53 = vpop.f32.mrf.mxu0 }
 0x1cb   : > { %v3592_v55 = vadd.f32 %v1173_v53, %v1061_v49 }
 0x1cd   : > { %1757 = vmatmul.f32.gmra.mxu0 %v2279_v52  ;;  %v1421_v57 = vpop.f32.mrf.mxu2 }
 0x1ce   : > { %v1485_v58 = vadd.f32 %v1421_v57, %v1338_v56 }
 0x1d0   : > { %v1277_v54 = vpop.f32.mrf.mxu1  ;;  %v1567_v59 = vpop.f32.mrf.mxu3 }
 0x1d1   : > { %v1631_v26 = vadd.f32 %v1567_v59, %v1485_v58  ;;  %v1339_v29 = vadd.f32 %v1277_v54, %v1193_v63  ;;  %v1197_v59 = vadd.f32 %v3517_v9, %v3515_v8 }
 0x1d2   : > { %v1713_v19 = vpop.f32.mrf.mxu0 }
 0x1d3   : > { %v1777_v0 = vadd.f32 %v1713_v19, %v1631_v26 }
 0x1d5   : > { %1825 = vst [vmem:[%s2926_s8] sm:$0xff] %v1777_v0  ;;  %v1424_v4 = vpop.f32.mrf.mxu2  ;;  %v1866_v12 = vmul.f32 %v1777_v0, %v1777_v0 }
 0x1d6   : > { %v1486_v5 = vadd.f32 %v1424_v4, %v1339_v29 }
 0x1d8   : > { %v1280_v2 = vpop.f32.mrf.mxu1  ;;  %v1570_v3 = vpop.f32.mrf.mxu3 }
 0x1d9   : > { %v1632_v6 = vadd.f32 %v1570_v3, %v1486_v5  ;;  %v1340_v35 = vadd.f32 %v1280_v2, %v1194_v7 }
 0x1da   : > { %v1716_v10 = vpop.f32.mrf.mxu0 }
 0x1db   : > { %v1778_v11 = vadd.f32 %v1716_v10, %v1632_v6  ;;  %v1198_v6 = vadd.f32 %v3526_v22, %v3524_v21 }
 0x1dd   : > { %1826 = vst [vmem:[%s2926_s8 + $0x8] sm:$0xff] %v1778_v11  ;;  %v1842_v13 = vadd.f32 %v1778_v11, %v1777_v0  ;;  %v1867_v15 = vmul.f32 %v1778_v11, %v1778_v11  ;;  %v1427_v16 = vpop.f32.mrf.mxu2 }
 0x1de   : > { %v1487_v14 = vadd.f32 %v1427_v16, %v1340_v35 }
 0x1df   : > { %v1882_v38 = vadd.f32 %v1867_v15, %v1866_v12 }
 0x1e0   : > { %v1283_v18 = vpop.f32.mrf.mxu1  ;;  %v1573_v20 = vpop.f32.mrf.mxu3 }
 0x1e1   : > { %v1633_v23 = vadd.f32 %v1573_v20, %v1487_v14  ;;  %v1341_v31 = vadd.f32 %v1283_v18, %v1195_v24 }
 0x1e2   : > { %v1719_v39 = vpop.f32.mrf.mxu0 }
 0x1e3   : > { %v1779_v28 = vadd.f32 %v1719_v39, %v1633_v23 }
 0x1e5   : > { %1827 = vst [vmem:[%s2926_s8 + $0x10] sm:$0xff] %v1779_v28  ;;  %v1843_v25 = vadd.f32 %v1842_v13, %v1779_v28  ;;  %v1868_v43 = vmul.f32 %v1779_v28, %v1779_v28  ;;  %v1430_v32 = vpop.f32.mrf.mxu2 }
 0x1e6   : > { %v1488_v33 = vadd.f32 %v1430_v32, %v1341_v31 }
 0x1e7   : > { %v1883_v34 = vadd.f32 %v1882_v38, %v1868_v43  ;;  %v1199_v38 = vadd.f32 %v3535_v40, %v3533_v37 }
 0x1e8   : > { %v1286_v41 = vpop.f32.mrf.mxu1  ;;  %v1576_v46 = vpop.f32.mrf.mxu3 }
 0x1e9   : > { %v1634_v42 = vadd.f32 %v1576_v46, %v1488_v33  ;;  %v1342_v45 = vadd.f32 %v1286_v41, %v1196_v47 }
 0x1ea   : > { %v1722_v44 = vpop.f32.mrf.mxu0 }
 0x1eb   : > { %v1780_v49 = vadd.f32 %v1722_v44, %v1634_v42 }
 0x1ed   : > { %1828 = vst [vmem:[%s2926_s8 + $0x18] sm:$0xff] %v1780_v49  ;;  %v1844_v48 = vadd.f32 %v1843_v25, %v1780_v49  ;;  %v1869_v50 = vmul.f32 %v1780_v49, %v1780_v49  ;;  %v1433_v53 = vpop.f32.mrf.mxu2 }
 0x1ee   : > { %v1489_v52 = vadd.f32 %v1433_v53, %v1342_v45 }
 0x1ef   : > { %v1884_v56 = vadd.f32 %v1883_v34, %v1869_v50 }
 0x1f0   : > { %v1289_v57 = vpop.f32.mrf.mxu1  ;;  %v1579_v58 = vpop.f32.mrf.mxu3 }
 0x1f1   : > { %v1635_v54 = vadd.f32 %v1579_v58, %v1489_v52  ;;  %v1343_v60 = vadd.f32 %v1289_v57, %v1197_v59 }
 0x1f2   : > { %v1725_v26 = vpop.f32.mrf.mxu0 }
 0x1f3   : > { %v1781_v63 = vadd.f32 %v1725_v26, %v1635_v54 }
 0x1f5   : > { %1829 = vst [vmem:[%s2926_s8 + $0x20] sm:$0xff] %v1781_v63  ;;  %v1845_v61 = vadd.f32 %v1844_v48, %v1781_v63  ;;  %v1870_v19 = vmul.f32 %v1781_v63, %v1781_v63  ;;  %v1436_v0 = vpop.f32.mrf.mxu2 }
 0x1f6   : > { %v1490_v29 = vadd.f32 %v1436_v0, %v1343_v60 }
 0x1f7   : > { %v1885_v4 = vadd.f32 %v1884_v56, %v1870_v19 }
 0x1f8   : > { %v1292_v5 = vpop.f32.mrf.mxu1  ;;  %v1582_v2 = vpop.f32.mrf.mxu3 }
 0x1f9   : > { %v1636_v3 = vadd.f32 %v1582_v2, %v1490_v29  ;;  %v1344_v8 = vadd.f32 %v1292_v5, %v1198_v6 }
 0x1fa   : > { %v1728_v7 = vpop.f32.mrf.mxu0 }
 0x1fb   : > { %v1782_v10 = vadd.f32 %v1728_v7, %v1636_v3 }
 0x1fd   : > { %1830 = vst [vmem:[%s2926_s8 + $0x28] sm:$0xff] %v1782_v10  ;;  %v1846_v9 = vadd.f32 %v1845_v61, %v1782_v10  ;;  %v1871_v11 = vmul.f32 %v1782_v10, %v1782_v10  ;;  %v1439_v35 = vpop.f32.mrf.mxu2 }
 0x1fe   : > { %v1491_v12 = vadd.f32 %v1439_v35, %v1344_v8 }
 0x1ff   : > { %v1886_v13 = vadd.f32 %v1885_v4, %v1871_v11 }
 0x200   : > { %v1295_v15 = vpop.f32.mrf.mxu1  ;;  %v1585_v16 = vpop.f32.mrf.mxu3 }
 0x201   : > { %v1637_v14 = vadd.f32 %v1585_v16, %v1491_v12  ;;  %v1345_v21 = vadd.f32 %v1295_v15, %v1199_v38 }
 0x202   : > { %v1731_v18 = vpop.f32.mrf.mxu0 }
 0x203   : > { %v1783_v20 = vadd.f32 %v1731_v18, %v1637_v14 }
 0x205   : > { %1831 = vst [vmem:[%s2926_s8 + $0x30] sm:$0xff] %v1783_v20  ;;  %v1847_v22 = vadd.f32 %v1846_v9, %v1783_v20  ;;  %v1872_v23 = vmul.f32 %v1783_v20, %v1783_v20  ;;  %v1442_v24 = vpop.f32.mrf.mxu2 }
 0x206   : > { %v1492_v39 = vadd.f32 %v1442_v24, %v1345_v21 }
 0x207   : > { %v1887_v28 = vadd.f32 %v1886_v13, %v1872_v23 }
 0x208   : > { %v1298_v31 = vpop.f32.mrf.mxu1  ;;  %v1588_v25 = vpop.f32.mrf.mxu3 }
 0x209   : > { %v1638_v43 = vadd.f32 %v1588_v25, %v1492_v39  ;;  %v1346_v34 = vadd.f32 %v1298_v31, %v3544_v62 }
 0x20a   : > { %v1734_v32 = vpop.f32.mrf.mxu0 }
 0x20b   : > { %v1784_v33 = vadd.f32 %v1734_v32, %v1638_v43 }
 0x20d   : > { %1832 = vst [vmem:[%s2926_s8 + $0x38] sm:$0xff] %v1784_v33  ;;  %v1848_v37 = vadd.f32 %v1847_v22, %v1784_v33  ;;  %v1873_v40 = vmul.f32 %v1784_v33, %v1784_v33  ;;  %v1445_v41 = vpop.f32.mrf.mxu2 }
 0x20e   : > { %v1493_v46 = vadd.f32 %v1445_v41, %v1346_v34 }
 0x20f   : > { %v1888_v42 = vadd.f32 %v1887_v28, %v1873_v40 }
 0x210   : > { %v1301_v47 = vpop.f32.mrf.mxu1  ;;  %v1591_v44 = vpop.f32.mrf.mxu3 }
 0x211   : > { %v1639_v49 = vadd.f32 %v1591_v44, %v1493_v46  ;;  %v1347_v50 = vadd.f32 %v1301_v47, %v3551_v30 }
 0x212   : > { %v1737_v45 = vpop.f32.mrf.mxu0 }
 0x213   : > { %v1785_v48 = vadd.f32 %v1737_v45, %v1639_v49 }
 0x215   : > { %1833 = vst [vmem:[%s2926_s8 + $0x40] sm:$0xff] %v1785_v48  ;;  %v1849_v53 = vadd.f32 %v1848_v37, %v1785_v48  ;;  %v1874_v52 = vmul.f32 %v1785_v48, %v1785_v48  ;;  %v1448_v56 = vpop.f32.mrf.mxu2 }
 0x216   : > { %v1494_v57 = vadd.f32 %v1448_v56, %v1347_v50 }
 0x217   : > { %v1889_v62 = vadd.f32 %v1888_v42, %v1874_v52 }
 0x218   : > { %v1304_v58 = vpop.f32.mrf.mxu1  ;;  %v1594_v54 = vpop.f32.mrf.mxu3 }
 0x219   : > { %v1640_v59 = vadd.f32 %v1594_v54, %v1494_v57  ;;  %v1348_v60 = vadd.f32 %v1304_v58, %v3558_v27 }
 0x21a   : > { %v1740_v26 = vpop.f32.mrf.mxu0 }
 0x21b   : > { %v1786_v63 = vadd.f32 %v1740_v26, %v1640_v59 }
 0x21d   : > { %1834 = vst [vmem:[%s2926_s8 + $0x48] sm:$0xff] %v1786_v63  ;;  %v1850_v61 = vadd.f32 %v1849_v53, %v1786_v63  ;;  %v1875_v19 = vmul.f32 %v1786_v63, %v1786_v63  ;;  %v1451_v0 = vpop.f32.mrf.mxu2 }
 0x21e   : > { %v1495_v29 = vadd.f32 %v1451_v0, %v1348_v60 }
 0x21f   : > { %v1890_v30 = vadd.f32 %v1889_v62, %v1875_v19 }
 0x220   : > { %v1307_v4 = vpop.f32.mrf.mxu1  ;;  %v1597_v5 = vpop.f32.mrf.mxu3 }
 0x221   : > { %v1641_v2 = vadd.f32 %v1597_v5, %v1495_v29  ;;  %v1349_v7 = vadd.f32 %v1307_v4, %v3565_v51 }
 0x222   : > { %v1743_v3 = vpop.f32.mrf.mxu0 }
 0x223   : > { %v1787_v6 = vadd.f32 %v1743_v3, %v1641_v2 }
 0x225   : > { %1835 = vst [vmem:[%s2926_s8 + $0x50] sm:$0xff] %v1787_v6  ;;  %v1851_v10 = vadd.f32 %v1850_v61, %v1787_v6  ;;  %v1876_v8 = vmul.f32 %v1787_v6, %v1787_v6  ;;  %v1454_v9 = vpop.f32.mrf.mxu2 }
 0x226   : > { %v1496_v11 = vadd.f32 %v1454_v9, %v1349_v7 }
 0x227   : > { %v1891_v27 = vadd.f32 %v1890_v30, %v1876_v8 }
 0x228   : > { %v1310_v35 = vpop.f32.mrf.mxu1  ;;  %v1600_v12 = vpop.f32.mrf.mxu3 }
 0x229   : > { %v1642_v13 = vadd.f32 %v1600_v12, %v1496_v11  ;;  %v1350_v14 = vadd.f32 %v1310_v35, %v3572_v1 }
 0x22a   : > { %v1746_v15 = vpop.f32.mrf.mxu0 }
 0x22b   : > { %v1788_v16 = vadd.f32 %v1746_v15, %v1642_v13 }
 0x22d   : > { %1836 = vst [vmem:[%s2926_s8 + $0x58] sm:$0xff] %v1788_v16  ;;  %v1852_v38 = vadd.f32 %v1851_v10, %v1788_v16  ;;  %v1877_v18 = vmul.f32 %v1788_v16, %v1788_v16  ;;  %v1457_v20 = vpop.f32.mrf.mxu2 }
 0x22e   : > { %v1497_v21 = vadd.f32 %v1457_v20, %v1350_v14 }
 0x22f   : > { %v1892_v51 = vadd.f32 %v1891_v27, %v1877_v18 }
 0x230   : > { %v1313_v22 = vpop.f32.mrf.mxu1  ;;  %v1603_v23 = vpop.f32.mrf.mxu3 }
 0x231   : > { %v1643_v24 = vadd.f32 %v1603_v23, %v1497_v21  ;;  %v1351_v31 = vadd.f32 %v1313_v22, %v3579_v17 }
 0x232   : > { %v1749_v39 = vpop.f32.mrf.mxu0 }
 0x233   : > { %v1789_v28 = vadd.f32 %v1749_v39, %v1643_v24 }
 0x235   : > { %1837 = vst [vmem:[%s2926_s8 + $0x60] sm:$0xff] %v1789_v28  ;;  %v1853_v25 = vadd.f32 %v1852_v38, %v1789_v28  ;;  %v1878_v43 = vmul.f32 %v1789_v28, %v1789_v28  ;;  %v1460_v1 = vpop.f32.mrf.mxu2 }
 0x236   : > { %v1498_v32 = vadd.f32 %v1460_v1, %v1351_v31 }
 0x237   : > { %v1893_v33 = vadd.f32 %v1892_v51, %v1878_v43 }
 0x238   : > { %v1316_v34 = vpop.f32.mrf.mxu1  ;;  %v1606_v37 = vpop.f32.mrf.mxu3 }
 0x239   : > { %v1644_v40 = vadd.f32 %v1606_v37, %v1498_v32  ;;  %v1352_v42 = vadd.f32 %v1316_v34, %v3586_v36 }
 0x23a   : > { %v1752_v41 = vpop.f32.mrf.mxu0 }
 0x23b   : > { %v1790_v46 = vadd.f32 %v1752_v41, %v1644_v40 }
 0x23d   : > { %1838 = vst [vmem:[%s2926_s8 + $0x68] sm:$0xff] %v1790_v46  ;;  %v1854_v47 = vadd.f32 %v1853_v25, %v1790_v46  ;;  %v1879_v44 = vmul.f32 %v1790_v46, %v1790_v46  ;;  %v1463_v17 = vpop.f32.mrf.mxu2 }
 0x23e   : > { %v1499_v49 = vadd.f32 %v1463_v17, %v1352_v42 }
 0x23f   : > { %v1894_v45 = vadd.f32 %v1893_v33, %v1879_v44 }
 0x240   : > { %v1609_v48 = vpop.f32.mrf.mxu3  ;;  %v1319_v50 = vpop.f32.mrf.mxu1 }
 0x241   : > { %v1645_v53 = vadd.f32 %v1609_v48, %v1499_v49  ;;  %v1353_v57 = vadd.f32 %v1319_v50, %v3592_v55 }
 0x242   : > { %v1755_v52 = vpop.f32.mrf.mxu0 }
 0x243   : > { %v1791_v56 = vadd.f32 %v1755_v52, %v1645_v53 }
 0x245   : > { %1839 = vst [vmem:[%s2926_s8 + $0x70] sm:$0xff] %v1791_v56  ;;  %v1855_v36 = vadd.f32 %v1854_v47, %v1791_v56  ;;  %v1880_v62 = vmul.f32 %v1791_v56, %v1791_v56  ;;  %v1466_v58 = vpop.f32.mrf.mxu2 }
 0x246   : > { %v1500_v54 = vadd.f32 %v1466_v58, %v1353_v57 }
 0x247   : > { %v1895_v59 = vadd.f32 %v1894_v45, %v1880_v62 }
 0x248   : > { %v1612_v26 = vpop.f32.mrf.mxu3 }
 0x249   : > { %v1646_v63 = vadd.f32 %v1612_v26, %v1500_v54 }
 0x24a   : > { %v1758_v60 = vpop.f32.mrf.mxu0 }
 0x24b   : > { %v1792_v55 = vadd.f32 %v1758_v60, %v1646_v63 }
 0x24d   : > { %1840 = vst [vmem:[%s2926_s8 + $0x78] sm:$0xff] %v1792_v55  ;;  %v1856_v61 = vadd.f32 %v1855_v36, %v1792_v55  ;;  %v1881_v19 = vmul.f32 %v1792_v55, %v1792_v55 }
 0x24e   : > { %2488 = shalt.err (!%p2485_p3)
}
 0x24f   : > { %s2614_s26 = smov 128   ;;  %s2615_s8 = smov 8   ;;  %v1857_v0 = vrot.slane %v1856_v61, 4  ;;  %v1896_v29 = vadd.f32 %v1895_v59, %v1881_v19  ;;  %v1841_v8 = vld [vmem:[%s2928_s9] sm:$0x1] }
 0x250   : > { %2358 = dma.vmem_to_hbm [thread:$0]  (%p2722_p8), %s1927_s25, 2048, %s1929_s28, %s1906_s20, %s2614_s26, %s2614_s26, %s2615_s8  }
 0x251   : > { %v1858_v30 = vadd.f32 %v1857_v0, %v1856_v61  ;;  %v1897_v4 = vrot.slane %v1896_v29, 4  ;;  %s2302_s29 = sshll.u32 %s2599_s19, 1  ;;  %v1865_v27 = vld [vmem:[%s2928_s9 + $0x1] sm:$0x1]  ;;  %s1943_s25 = sshll.u32 %s2928_s9, 4  ;;  %s1944_s25 = int_to_ptr.vmem [resolvable:$true] %s1943_s25 }
 0x252   : > { %s1941_s5 = scalar_lea.hbm %s3713_s3, %s2302_s29  ;;  %s3733_s19 = sand.u32 1, %s2575_s13  }
 0x253   : > { %v1859_v5 = vrot.slane %v1858_v30, 2  ;;  %v1898_v2 = vadd.f32 %v1897_v4, %v1896_v29  ;;  %s1945_s28 = sshll.u32 %s1941_s5, 4  ;;  %s1911_s20 = scalar_lea.sflag [#allocation7], %s3733_s19  ;;  %s1946_s28 = int_to_ptr.hbm [resolvable:$true] %s1945_s28 }
 0x254   : > { %s2503_s30 = sshra.s32 %s1946_s28, 4  ;;  %s2509_s4 = scalar_lea.hbm %s3713_s3, 4  ;;  %s2504_s30 = int_to_ptr.hbm [resolvable:$true] %s2503_s30 }
 0x255   : > { %v1860_v3 = vadd.f32 %v1859_v5, %v1858_v30  ;;  %v1899_v6 = vrot.slane %v1898_v2, 2  ;;  %s2505_s7 = scalar_lea.hbm %s2504_s30, 2  ;;  %p2510_p6 = scmp.lt.s32.totalorder %s2504_s30, %s3713_s3 }
 0x256   : > { %p2506_p8 = scmp.ne.s32.totalorder %s2504_s30, %s2505_s7  ;;  %p2511_p7 = scmp.lt.s32.totalorder %s2509_s4, %s2505_s7 }
 0x257   : > { %v1861_v7 = vrot.slane %v1860_v3, 1  ;;  %v1900_v10 = vadd.f32 %v1899_v6, %v1898_v2 }
 0x258   : > { %p2507_p4 = pnand %p2506_p8, %p2745_p13  ;;  %p2512_p10 = por %p2511_p7, %p2510_p6 }
 0x259   : > { %v1862_v9 = vadd.f32 %v1861_v7, %v1860_v3  ;;  %v1901_v11 = vrot.slane %v1900_v10, 1 }
 0x25a   : > { %p2508_p5 = pneg %p2507_p4 }
 0x25b   : > { %v1863_v35 = vadd.f32 %v1862_v9, %v1841_v8  ;;  %v1902_v12 = vadd.f32 %v1901_v11, %v1900_v10 }
 0x25c   : > { %p2513_p11 = pnand %p2512_p10, %p2508_p5 }
 0x25d   : > { %1864 = vst [vmem:[%s2928_s9] sm:$0x1] %v1863_v35  ;;  %v1903_v13 = vadd.f32 %v1902_v12, %v1865_v27 }
 0x25f   : > { %1904 = vst [vmem:[%s2928_s9 + $0x1] sm:$0x1] %v1903_v13 }
 0x260   : > { %2516 = shalt.err (!%p2513_p11)
}
 0x261   : > { %2359 = dma.vmem_to_hbm [thread:$0]  (%p2745_p13), %s1944_s25, 32, %s1946_s28, %s1911_s20  }
 0x262 PF: > { %p2369_p12 = scmp.ge.s32.totalorder %s2611_s22, 2  ;;  %s1957_s9 = sand.u32 1, %s2583_s15  }
 0x263   : > { %s1958_s8 = scalar_lea.sflag [#allocation5], %s1957_s9 }
 0x264   : > { %p2363_p0 = pnand %p2369_p12, %p2728_p9 }
 0x266   : > { %p2364_p2 = pneg %p2363_p0 }
 0x268   : > { %2562 = dma.done.wait (%p2364_p2), %s1958_s8, 2048  }
 0x269   : > { %2564 = vsyncadd (%p2364_p2), %s1958_s8, 4294965248  ;;  %s1967_s29 = sand.u32 1, %s2571_s12   ;;  %p2366_p3 = pnand %p2369_p12, %p2753_p1 }
 0x26a   : > { %s1968_s23 = scalar_lea.sflag [#allocation7], %s1967_s29 }
 0x26b   : > { %p2367_p8 = pneg %p2366_p3 }
 0x26d   : > { %2566 = dma.done.wait (%p2367_p8), %s1968_s23, 32  }
 0x26e   : > { %2568 = vsyncadd (%p2367_p8), %s1968_s23, 4294967264  ;;  %s20_s22 = sadd.s32 1, %s2611_s22   ;;  %s3734_s6 = sld [smem:[#allocation14_spill]] }
 0x26f   : > { %p17_p13 = scmp.ge.s32.totalorder %s20_s22, 6   ;;  %s3735_s18 = sld [smem:[#allocation10_spill]] }
 0x270   : > { %s3736_s19 = sld [smem:[#allocation11_spill]]  ;;  %s3739_s12 = smov %s2575_s13 }
 0x271   : > { %s3737_s20 = sld [smem:[#allocation12_spill]]  ;;  %s3740_s13 = smov %s2579_s14 }
 0x272   : > { %s3738_s21 = sld [smem:[#allocation13_spill]]  ;;  %s3741_s14 = smov %s2738_s10 }
 0x273   : > { %s3742_s15 = smov %s2587_s16  ;;  %s3743_s16 = smov %s2591_s17 }
 0x274   : > { %s3744_s17 = smov %s3734_s6  ;;  %19 = sbr.rel (!%p17_p13) target bundleno = 11 (0xb), region = 137 }
 0x279   :  { %1974 = vsyncpa [#allocation5], 1 }
 0x27a   :  { %1976 = vsyncpa [#allocation5 + $0x1], 1 }
 0x27b   :  { %1977 = vsyncpa [#allocation7], 1 }
 0x27c   :  { %1979 = vsyncpa [#allocation7 + $0x1], 1 }

</bundles_post_ra>
